<compile_context>
chip_gen: v7x
topology: tpu7x:2x2x1
jax: 0.10.0
libtpu: 0.0.40
codegen_flags: <defaults>
</compile_context>

<pallas_src>
import functools
import math

import jax
import jax.numpy as jnp
from jax.experimental import pallas as pl
from jax.experimental.pallas import tpu as pltpu


_MIN_PALLAS_ROWS = 64  # below this, a single XLA dot beats the custom-call overhead


def _round_up(x, m):
    return (x + m - 1) // m * m


def _choose_tm(M, tm_max=1024):
    """Sublane-aligned row tile; prefer an even grid count for v7x megacore."""
    tm = min(tm_max, _round_up(max(M, 1), 8))
    grid = pl.cdiv(M, tm)
    if grid > 1 and grid % 2 == 1:
        tm_alt = _round_up(pl.cdiv(M, grid + 1), 8)
        if tm_alt >= 8 and pl.cdiv(M, tm_alt) % 2 == 0:
            tm = tm_alt
    return tm


def linear_kernel(x_ref, w_ref, b_ref, o_ref):
    # Full-K dot on the MXU: bf16 operands, f32 accumulate, f32 bias epilogue.
    x_bf16 = x_ref[...].astype(jnp.bfloat16)
    o_ref[...] = (
        jnp.dot(x_bf16, w_ref[...], preferred_element_type=jnp.float32)
        + b_ref[...]
    ).astype(o_ref.dtype)


@functools.partial(jax.jit, static_argnames=("tm_max",))
def pallas_linear(x2d, w, b, *, tm_max=1024):
    """x2d: [M, K] (f32), w: [K, N] (bf16), b: [N] (f32) -> [M, N] (x2d.dtype)."""
    M, K = x2d.shape
    K2, N = w.shape
    assert K == K2, (K, K2)
    b2d = b.reshape(1, N).astype(jnp.float32)

    tm = _choose_tm(M, tm_max)
    grid_m = pl.cdiv(M, tm)

    x_bytes = jnp.dtype(x2d.dtype).itemsize
    w_bytes = jnp.dtype(w.dtype).itemsize
    o_bytes = x_bytes
    # Double-buffered x/out tiles + (conservatively double-buffered) resident
    # bf16 W + bias + headroom.  For tm=1024 this is ~19 MiB; the 48 MiB cap
    # keeps us safely inside v7x's 64 MiB-per-TensorCore physical VMEM while
    # never under-provisioning v5e/v6e (128 MiB physical).
    vmem_bytes = (
        2 * tm * K * x_bytes
        + 2 * K * N * w_bytes
        + 2 * tm * N * o_bytes
        + 2 * N * 4
        + (2 << 20)
    )
    vmem_bytes = min(vmem_bytes, 48 << 20)

    cost = pl.CostEstimate(
        flops=2 * M * K * N,
        transcendentals=0,
        bytes_accessed=M * K * x_bytes + K * N * w_bytes + N * 4 + M * N * o_bytes,
    )

    return pl.pallas_call(
        linear_kernel,
        out_shape=jax.ShapeDtypeStruct((M, N), x2d.dtype),
        grid_spec=pltpu.PrefetchScalarGridSpec(
            num_scalar_prefetch=0,
            grid=(grid_m,),
            in_specs=[
                pl.BlockSpec((tm, K), lambda i: (i, 0)),   # x row-tile (f32)
                pl.BlockSpec((K, N), lambda i: (0, 0)),    # W resident (bf16)
                pl.BlockSpec((1, N), lambda i: (0, 0)),    # bias resident (f32)
            ],
            out_specs=pl.BlockSpec((tm, N), lambda i: (i, 0)),  # lane-dense (6x128)
        ),
        compiler_params=pltpu.CompilerParams(
            dimension_semantics=("parallel",),
            vmem_limit_bytes=int(vmem_bytes),
        ),
        cost_estimate=cost,
    )(x2d, w, b2d)


class ModelLinear:
    """JAX/Pallas port of model_Linear: forward(img) = linear1(img).

    linear2 (128 -> 768) is initialized for parity with the PyTorch module's
    __init__ but is unused in forward, exactly like the reference.

    NOTE: weights are stored as [in_features, out_features]. A real PyTorch
    nn.Linear checkpoint ([out, in]) must be transposed before loading here.
    """

    def __init__(self, key):
        k1, k2, k3, k4 = jax.random.split(key, 4)
        bound1 = 1.0 / math.sqrt(1024.0)
        w1_f32 = jax.random.uniform(k1, (1024, 768), jnp.float32, -bound1, bound1)
        # Store the matmul operand in bf16: halves the resident-weight DMA and
        # runs the MXU at full rate; accumulation / bias stay f32.
        self.w1 = w1_f32.astype(jnp.bfloat16)
        self.b1 = jax.random.uniform(k2, (768,), jnp.float32, -bound1, bound1)
        bound2 = 1.0 / math.sqrt(128.0)
        self.w2 = jax.random.uniform(
            k3, (128, 768), jnp.float32, -bound2, bound2
        ).astype(jnp.bfloat16)  # unused in forward (matches reference module)
        self.b2 = jax.random.uniform(k4, (768,), jnp.float32, -bound2, bound2)

    def __call__(self, img):
        # img: [..., 1024] -> [..., 768]
        lead = img.shape[:-1]
        x2d = img.reshape(-1, img.shape[-1])
        M = x2d.shape[0]
        if M < _MIN_PALLAS_ROWS:
            # Tiny-M fallback: one fused XLA dot, same bf16-in / f32-acc numerics.
            y2d = (
                jnp.dot(
                    x2d.astype(jnp.bfloat16),
                    self.w1,
                    preferred_element_type=jnp.float32,
                )
                + self.b1
            ).astype(x2d.dtype)
        else:
            y2d = pallas_linear(x2d, self.w1, self.b1)
        return y2d.reshape(*lead, 768)


if __name__ == "__main__":
    key = jax.random.PRNGKey(0)
    k_model, k_in1, k_in2 = jax.random.split(key, 3)

    model = ModelLinear(k_model)
    w1_f32 = model.w1.astype(jnp.float32)

    # Pallas path: M = 2*64 = 128 rows (single lane-dense tile, one grid step).
    img = jax.random.normal(k_in1, (2, 64, 1024), jnp.float32)
    out = jax.block_until_ready(model(img))
    ref = jnp.matmul(img, w1_f32, precision=jax.lax.Precision.HIGHEST) + model.b1
    assert out.shape == (2, 64, 768), out.shape
    assert jnp.allclose(out, ref, atol=2e-2, rtol=2e-2), float(
        jnp.max(jnp.abs(out - ref))
    )

    # Tiny-M fallback path (same forward semantics).
    img_small = jax.random.normal(k_in2, (2, 8, 1024), jnp.float32)
    out_small = jax.block_until_ready(model(img_small))
    ref_small = (
        jnp.matmul(img_small, w1_f32, precision=jax.lax.Precision.HIGHEST) + model.b1
    )
    assert out_small.shape == (2, 8, 768), out_small.shape
    assert jnp.allclose(out_small, ref_small, atol=2e-2, rtol=2e-2)

    print("KERNEL_OK")
</pallas_src>

<mosaic_0001>
module attributes {stable_mosaic.version = 11 : i64} {
  func.func @linear_kernel(%arg0: i32, %arg1: memref<128x1024xf32, #tpu.memory_space<vmem>>, %arg2: memref<1024x768xbf16, #tpu.memory_space<vmem>>, %arg3: memref<1x768xf32, #tpu.memory_space<vmem>>, %arg4: memref<128x768xf32, #tpu.memory_space<vmem>>) attributes {dimension_semantics = [#tpu.dimension_semantics<parallel>], iteration_bounds = array<i64: 1>, scalar_prefetch = 0 : i64, scratch_operands = 0 : i64, tpu.core_type = #tpu.core_type<tc>, window_params = [{transform_indices = @transform_0, window_bounds = array<i64: 128, 1024>}, {pipeline_mode = #tpu.pipeline_mode<synchronous>, transform_indices = @transform_1, window_bounds = array<i64: 1024, 768>}, {pipeline_mode = #tpu.pipeline_mode<synchronous>, transform_indices = @transform_2, window_bounds = array<i64: 1, 768>}, {transform_indices = @transform_3, window_bounds = array<i64: 128, 768>}]} {
    %c0 = arith.constant 0 : index
    %c0_0 = arith.constant 0 : index
    %0 = vector.load %arg1[%c0, %c0_0] : memref<128x1024xf32, #tpu.memory_space<vmem>>, vector<128x1024xf32>
    %1 = arith.truncf %0 : vector<128x1024xf32> to vector<128x1024xbf16>
    %c0_1 = arith.constant 0 : index
    %c0_2 = arith.constant 0 : index
    %2 = vector.load %arg2[%c0_1, %c0_2] : memref<1024x768xbf16, #tpu.memory_space<vmem>>, vector<1024x768xbf16>
    %cst = arith.constant dense<0.000000e+00> : vector<128x768xf32>
    %3 = tpu.matmul %1, %2, %cst {dimension_numbers = #tpu.dot_dimension_numbers<[1], [0], [0], [1], [0, 0, 1, 1], [], []>} : vector<128x1024xbf16>, vector<1024x768xbf16>, vector<128x768xf32> -> vector<128x768xf32>
    %c0_3 = arith.constant 0 : index
    %c0_4 = arith.constant 0 : index
    %4 = vector.load %arg3[%c0_3, %c0_4] : memref<1x768xf32, #tpu.memory_space<vmem>>, vector<1x768xf32>
    %5 = vector.broadcast %4 : vector<1x768xf32> to vector<128x768xf32>
    %6 = arith.addf %3, %5 : vector<128x768xf32>
    %c0_5 = arith.constant 0 : index
    %c0_6 = arith.constant 0 : index
    %7 = vector.load %arg4[%c0_5, %c0_6] : memref<128x768xf32, #tpu.memory_space<vmem>>, vector<128x768xf32>
    tpu.vector_store %arg4[%c0_5, %c0_6], %6 {strides = array<i32>} : memref<128x768xf32, #tpu.memory_space<vmem>>, vector<128x768xf32>,
    return
  }
  func.func @transform_0(%arg0: i32) -> (i32, i32) {
    %c0_i32 = arith.constant 0 : i32
    %c0_i32_0 = arith.constant 0 : i32
    return %arg0, %c0_i32 : i32, i32
  }
  func.func @transform_1(%arg0: i32) -> (i32, i32) {
    %c0_i32 = arith.constant 0 : i32
    %c0_i32_0 = arith.constant 0 : i32
    %c0_i32_1 = arith.constant 0 : i32
    return %c0_i32, %c0_i32_0 : i32, i32
  }
  func.func @transform_2(%arg0: i32) -> (i32, i32) {
    %c0_i32 = arith.constant 0 : i32
    %c0_i32_0 = arith.constant 0 : i32
    %c0_i32_1 = arith.constant 0 : i32
    return %c0_i32, %c0_i32_0 : i32, i32
  }
  func.func @transform_3(%arg0: i32) -> (i32, i32) {
    %c0_i32 = arith.constant 0 : i32
    %c0_i32_0 = arith.constant 0 : i32
    return %arg0, %c0_i32 : i32, i32
  }
}

</mosaic_0001>

<bundles_post_ra>
// kernel: pallas_linear.1
= control target key start
LH: loop header
LB: loop body
LE: loop exit
PB: predicated region body
PF: predicated region fallthrough
CT: control target
= control target key end

     0   :  { %8 = vsyncpa [#allocation3], 0  ;;  %s5978_s0 = inlined_call_operand.hbm [shape: f32[128,1024], index: 0, kind: input, shape index: {}]   ;;  %s5979_s1 = inlined_call_operand.hbm [shape: bf16[1024,768], index: 1, kind: input, shape index: {}]   ;;  %s5980_s2 = inlined_call_operand.vmem [shape: f32[1,768], index: 2, kind: input, shape index: {}]   ;;  %s5981_s3 = inlined_call_operand.hbm [shape: f32[128,768], index: 3, kind: output, shape index: {}]  }
   0x1   :  { %9 = vsyncpa [#allocation6], 0 }
   0x2   :  { %10 = vsyncpa [#allocation4], 0  ;;  %s5466_s12 = smov [#allocation2]   ;;  %s5394_s16 = scalar_lea.hbm %s5978_s0, 16384 }
   0x3   :  { %s16_s13 = sshll.u32 %s5466_s12, 4  ;;  %p5395_p0 = scmp.ne.s32.totalorder %s5978_s0, %s5394_s16  ;;  %s17_s13 = int_to_ptr.vmem [resolvable:$true] %s16_s13 }
   0x4   :  { %p5398_p1 = scmp.lt.u32.totalorder %s5394_s16, %s5978_s0 }
   0x6   :  { %p5400_p2 = pnand %p5398_p1, %p5395_p0 }
   0x8   :  { %5403 = shalt.err (!%p5400_p2)
}
   0x9   :  { %s5404_s21 = scalar_lea.vmem %s17_s13, 16384  ;;  %p5409_p4 = scmp.lt.s32.totalorder %s17_s13, %s17_s13 }
   0xa   :  { %p5405_p3 = scmp.ne.s32.totalorder %s17_s13, %s5404_s21  ;;  %p5410_p5 = scmp.lt.s32.totalorder %s5404_s21, %s5404_s21 }
   0xc   :  { %p5411_p6 = por %p5410_p5, %p5409_p4 }
   0xe   :  { %p5412_p7 = pnand %p5411_p6, %p5405_p3 }
  0x10   :  { %5415 = shalt.err (!%p5412_p7)
}
  0x11   :  { %s5467_s22 = smov 1024   ;;  %s5468_s23 = smov 64  }
  0x12   :  { %22 = dma.hbm_to_vmem [thread:$0]  %s5978_s0, 16384, %s17_s13, [#allocation3], %s5467_s22, %s5467_s22, %s5468_s23  }
  0x13   :  { %s5469_s26 = smov [#allocation5]   ;;  %s5416_s30 = scalar_lea.hbm %s5979_s1, 49152 }
  0x14   :  { %s28_s27 = sshll.u32 %s5469_s26, 4  ;;  %p5417_p8 = scmp.ne.s32.totalorder %s5979_s1, %s5416_s30  ;;  %s29_s27 = int_to_ptr.vmem [resolvable:$true] %s28_s27 }
  0x15   :  { %p5420_p9 = scmp.lt.u32.totalorder %s5416_s30, %s5979_s1 }
  0x17   :  { %p5422_p10 = pnand %p5420_p9, %p5417_p8 }
  0x19   :  { %5425 = shalt.err (!%p5422_p10)
}
  0x1a   :  { %s5426_s8 = scalar_lea.vmem %s29_s27, 49152  ;;  %p5431_p12 = scmp.lt.s32.totalorder %s29_s27, %s29_s27 }
  0x1b   :  { %p5427_p11 = scmp.ne.s32.totalorder %s29_s27, %s5426_s8  ;;  %p5432_p13 = scmp.lt.s32.totalorder %s5426_s8, %s5426_s8 }
  0x1d   :  { %p5433_p0 = por %p5432_p13, %p5431_p12 }
  0x1f   :  { %p5434_p1 = pnand %p5433_p0, %p5427_p11 }
  0x21   :  { %5437 = shalt.err (!%p5434_p1)
}
  0x22   :  { %s5470_s0 = smov 384   ;;  %s5471_s9 = smov 24  }
  0x23   :  { %34 = dma.hbm_to_vmem [thread:$0]  %s5979_s1, 49152, %s29_s27, [#allocation6], %s5470_s0, %s5470_s0, %s5471_s9  }
  0x24   :  { %5460 = dma.done.wait [#allocation3], 16384  }
  0x25   :  { %5461 = vsyncadd [#allocation3], 4294950912 }
  0x26   :  { %5462 = dma.done.wait [#allocation6], 49152  }
  0x27   :  { %5463 = vsyncadd [#allocation6], 4294918144  ;;  %v4818_v0 = vld [vmem:[#allocation5 + $0x4] ss:$24 sps:$4 sm:$0xff]   ;;  %v4822_v2 = vld [vmem:[#allocation5] ss:$24 sps:$4 sm:$0xff]  }
  0x28   :  { %v4820_v1 = vld [vmem:[#allocation5 + $0x604] ss:$24 sps:$4 sm:$0xff]   ;;  %2571 = vmatprep.subr.bf16.mxu1 %v4818_v0  ;;  %v4823_v3 = vld [vmem:[#allocation5 + $0x600] ss:$24 sps:$4 sm:$0xff]   ;;  %v4824_v4 = vld [vmem:[#allocation5 + $0x34] ss:$24 sps:$4 sm:$0xff]  }
  0x29   :  { %2797 = vmatprep.subr.bf16.mxu0 %v4820_v1  ;;  %2572 = vmatpush1.bf16.msra.mxu1 %v4822_v2  ;;  %v4826_v5 = vld [vmem:[#allocation5 + $0x634] ss:$24 sps:$4 sm:$0xff]   ;;  %v4828_v6 = vld [vmem:[#allocation5 + $0x30] ss:$24 sps:$4 sm:$0xff]   ;;  %v4830_v8 = vld [vmem:[#allocation5 + $0x64] ss:$24 sps:$4 sm:$0xff]  }
  0x2a   :  { %2798 = vmatpush1.bf16.msra.mxu0 %v4823_v3  ;;  %2573 = vmatprep.subr.bf16.mxu1 %v4824_v4  ;;  %v4829_v7 = vld [vmem:[#allocation5 + $0x630] ss:$24 sps:$4 sm:$0xff]   ;;  %v4832_v9 = vld [vmem:[#allocation5 + $0x664] ss:$24 sps:$4 sm:$0xff]   ;;  %v4834_v10 = vld [vmem:[#allocation5 + $0x60] ss:$24 sps:$4 sm:$0xff]  }
  0x2b   :  { %2799 = vmatprep.subr.bf16.mxu0 %v4826_v5  ;;  %v4835_v11 = vld [vmem:[#allocation5 + $0x660] ss:$24 sps:$4 sm:$0xff]   ;;  %v4836_v12 = vld [vmem:[#allocation5 + $0x94] ss:$24 sps:$4 sm:$0xff]   ;;  %v4840_v14 = vld [vmem:[#allocation5 + $0x90] ss:$24 sps:$4 sm:$0xff]  }
  0x2c   :  { %v4838_v13 = vld [vmem:[#allocation5 + $0x694] ss:$24 sps:$4 sm:$0xff]   ;;  %v4841_v15 = vld [vmem:[#allocation5 + $0x690] ss:$24 sps:$4 sm:$0xff]   ;;  %v4842_v16 = vld [vmem:[#allocation5 + $0xc4] ss:$24 sps:$4 sm:$0xff]  }
  0x2d   :  { %2574 = vmatpush1.bf16.msra.mxu1 %v4828_v6  ;;  %v4844_v17 = vld [vmem:[#allocation5 + $0x6c4] ss:$24 sps:$4 sm:$0xff]   ;;  %v4846_v18 = vld [vmem:[#allocation5 + $0xc0] ss:$24 sps:$4 sm:$0xff]   ;;  %v4848_v20 = vld [vmem:[#allocation5 + $0xf4] ss:$24 sps:$4 sm:$0xff]  }
  0x2e   :  { %2800 = vmatpush1.bf16.msra.mxu0 %v4829_v7  ;;  %2575 = vmatprep.subr.bf16.mxu1 %v4830_v8  ;;  %v4847_v19 = vld [vmem:[#allocation5 + $0x6c0] ss:$24 sps:$4 sm:$0xff]   ;;  %v4850_v21 = vld [vmem:[#allocation5 + $0x6f4] ss:$24 sps:$4 sm:$0xff]   ;;  %v4852_v22 = vld [vmem:[#allocation5 + $0xf0] ss:$24 sps:$4 sm:$0xff]  }
  0x2f   :  { %2801 = vmatprep.subr.bf16.mxu0 %v4832_v9  ;;  %v4853_v23 = vld [vmem:[#allocation5 + $0x6f0] ss:$24 sps:$4 sm:$0xff]   ;;  %v4854_v24 = vld [vmem:[#allocation5 + $0x124] ss:$24 sps:$4 sm:$0xff]   ;;  %v4858_v26 = vld [vmem:[#allocation5 + $0x120] ss:$24 sps:$4 sm:$0xff]  }
  0x30   :  { %v4856_v25 = vld [vmem:[#allocation5 + $0x724] ss:$24 sps:$4 sm:$0xff]   ;;  %v4859_v27 = vld [vmem:[#allocation5 + $0x720] ss:$24 sps:$4 sm:$0xff]   ;;  %v4860_v28 = vld [vmem:[#allocation5 + $0x154] ss:$24 sps:$4 sm:$0xff]  }
  0x31   :  { %2576 = vmatpush1.bf16.msra.mxu1 %v4834_v10  ;;  %v4862_v29 = vld [vmem:[#allocation5 + $0x754] ss:$24 sps:$4 sm:$0xff]   ;;  %v4864_v30 = vld [vmem:[#allocation5 + $0x150] ss:$24 sps:$4 sm:$0xff]   ;;  %v4866_v32 = vld [vmem:[#allocation5 + $0x184] ss:$24 sps:$4 sm:$0xff]  }
  0x32   :  { %2802 = vmatpush1.bf16.msra.mxu0 %v4835_v11  ;;  %2577 = vmatprep.subr.bf16.mxu1 %v4836_v12  ;;  %v4865_v31 = vld [vmem:[#allocation5 + $0x750] ss:$24 sps:$4 sm:$0xff]   ;;  %v4868_v33 = vld [vmem:[#allocation5 + $0x784] ss:$24 sps:$4 sm:$0xff]   ;;  %v4870_v34 = vld [vmem:[#allocation5 + $0x180] ss:$24 sps:$4 sm:$0xff]  }
  0x33   :  { %2803 = vmatprep.subr.bf16.mxu0 %v4838_v13  ;;  %v4871_v35 = vld [vmem:[#allocation5 + $0x780] ss:$24 sps:$4 sm:$0xff]   ;;  %v4872_v36 = vld [vmem:[#allocation5 + $0x1b4] ss:$24 sps:$4 sm:$0xff]   ;;  %v4876_v38 = vld [vmem:[#allocation5 + $0x1b0] ss:$24 sps:$4 sm:$0xff]  }
  0x34   :  { %v4874_v37 = vld [vmem:[#allocation5 + $0x7b4] ss:$24 sps:$4 sm:$0xff]   ;;  %v4877_v39 = vld [vmem:[#allocation5 + $0x7b0] ss:$24 sps:$4 sm:$0xff]   ;;  %v4878_v40 = vld [vmem:[#allocation5 + $0x1e4] ss:$24 sps:$4 sm:$0xff]  }
  0x35   :  { %2578 = vmatpush1.bf16.msra.mxu1 %v4840_v14  ;;  %v4880_v41 = vld [vmem:[#allocation5 + $0x7e4] ss:$24 sps:$4 sm:$0xff]   ;;  %v4882_v42 = vld [vmem:[#allocation5 + $0x1e0] ss:$24 sps:$4 sm:$0xff]   ;;  %v4884_v44 = vld [vmem:[#allocation5 + $0x214] ss:$24 sps:$4 sm:$0xff]  }
  0x36   :  { %2804 = vmatpush1.bf16.msra.mxu0 %v4841_v15  ;;  %2579 = vmatprep.subr.bf16.mxu1 %v4842_v16  ;;  %v4883_v43 = vld [vmem:[#allocation5 + $0x7e0] ss:$24 sps:$4 sm:$0xff]   ;;  %v4886_v45 = vld [vmem:[#allocation5 + $0x814] ss:$24 sps:$4 sm:$0xff]   ;;  %v4888_v50 = vld [vmem:[#allocation5 + $0x210] ss:$24 sps:$4 sm:$0xff]  }
  0x37   :  { %2805 = vmatprep.subr.bf16.mxu0 %v4844_v17  ;;  %v44_v46 = vld [vmem:[#allocation2 + $0x8] sm:$0xff]  ;;  %v4890_v54 = vld [vmem:[#allocation5 + $0x244] ss:$24 sps:$4 sm:$0xff]   ;;  %v4894_v56 = vld [vmem:[#allocation5 + $0x240] ss:$24 sps:$4 sm:$0xff]  }
  0x38   :  { %v52_v47 = vld [vmem:[#allocation2 + $0x48] sm:$0xff]  ;;  %v4892_v55 = vld [vmem:[#allocation5 + $0x844] ss:$24 sps:$4 sm:$0xff]   ;;  %v4895_v57 = vld [vmem:[#allocation5 + $0x840] ss:$24 sps:$4 sm:$0xff]  }
  0x39   :  { %2580 = vmatpush1.bf16.msra.mxu1 %v4846_v18  ;;  %v48_v48 = vld [vmem:[#allocation2 + $0x28] sm:$0xff]  ;;  %v5519_v52 = vpack.c.bf16 %v52_v47, %v44_v46  ;;  %v4902_v62 = vld [vmem:[#allocation5 + $0x2a4] ss:$24 sps:$4 sm:$0xff]   ;;  %v4906_v0 = vld [vmem:[#allocation5 + $0x2a0] ss:$24 sps:$4 sm:$0xff]  }
  0x3a   :  { %2806 = vmatpush1.bf16.msra.mxu0 %v4847_v19  ;;  %2581 = vmatprep.subr.bf16.mxu1 %v4848_v20  ;;  %v56_v49 = vld [vmem:[#allocation2 + $0x68] sm:$0xff]  ;;  %v4904_v63 = vld [vmem:[#allocation5 + $0x8a4] ss:$24 sps:$4 sm:$0xff]   ;;  %v4907_v1 = vld [vmem:[#allocation5 + $0x8a0] ss:$24 sps:$4 sm:$0xff]  }
  0x3b   :  { %2807 = vmatprep.subr.bf16.mxu0 %v4850_v21  ;;  %v4889_v51 = vld [vmem:[#allocation5 + $0x810] ss:$24 sps:$4 sm:$0xff]   ;;  %v5521_v53 = vpack.c.bf16 %v56_v49, %v48_v48  ;;  %2603 = vmatprep.mubr.bf16.mxu1 %v5519_v52  ;;  %v4896_v58 = vld [vmem:[#allocation5 + $0x274] ss:$24 sps:$4 sm:$0xff]   ;;  %v43_v6 = vld [vmem:[#allocation2] sm:$0xff] }
  0x3c   :  { %v4898_v59 = vld [vmem:[#allocation5 + $0x874] ss:$24 sps:$4 sm:$0xff]   ;;  %v4900_v60 = vld [vmem:[#allocation5 + $0x270] ss:$24 sps:$4 sm:$0xff]   ;;  %v51_v7 = vld [vmem:[#allocation2 + $0x40] sm:$0xff] }
  0x3d   :  { %2582 = vmatpush1.bf16.msra.mxu1 %v4852_v22  ;;  %2829 = vmatprep.mubr.bf16.mxu0 %v5521_v53  ;;  %v4901_v61 = vld [vmem:[#allocation5 + $0x870] ss:$24 sps:$4 sm:$0xff]   ;;  %v4908_v2 = vld [vmem:[#allocation5 + $0x2d4] ss:$24 sps:$4 sm:$0xff]   ;;  %v47_v8 = vld [vmem:[#allocation2 + $0x20] sm:$0xff]  ;;  %v5525_v16 = vpack.c.bf16 %v51_v7, %v43_v6 }
  0x3e   :  { %2808 = vmatpush1.bf16.msra.mxu0 %v4853_v23  ;;  %2583 = vmatprep.subr.bf16.mxu1 %v4854_v24  ;;  %v4910_v3 = vld [vmem:[#allocation5 + $0x8d4] ss:$24 sps:$4 sm:$0xff]   ;;  %v4912_v4 = vld [vmem:[#allocation5 + $0x2d0] ss:$24 sps:$4 sm:$0xff]   ;;  %v55_v9 = vld [vmem:[#allocation2 + $0x60] sm:$0xff] }
  0x3f   :  { %2809 = vmatprep.subr.bf16.mxu0 %v4856_v25  ;;  %v4913_v5 = vld [vmem:[#allocation5 + $0x8d0] ss:$24 sps:$4 sm:$0xff]   ;;  %v4916_v10 = vld [vmem:[#allocation5 + $0x304] ss:$24 sps:$4 sm:$0xff]   ;;  %v4914_v12 = vld [vmem:[#allocation5 + $0x300] ss:$24 sps:$4 sm:$0xff]   ;;  %v5527_v17 = vpack.c.bf16 %v55_v9, %v47_v8 }
  0x40   :  { %v4919_v11 = vld [vmem:[#allocation5 + $0x904] ss:$24 sps:$4 sm:$0xff]   ;;  %v4917_v13 = vld [vmem:[#allocation5 + $0x900] ss:$24 sps:$4 sm:$0xff]   ;;  %v60_v14 = vld [vmem:[#allocation2 + $0x88] sm:$0xff] }
  0x41   :  { %2584 = vmatpush1.bf16.msra.mxu1 %v4858_v26  ;;  %v68_v15 = vld [vmem:[#allocation2 + $0xc8] sm:$0xff]  ;;  %v59_v26 = vld [vmem:[#allocation2 + $0x80] sm:$0xff] }
  0x42   :  { %2810 = vmatpush1.bf16.msra.mxu0 %v4859_v27  ;;  %2585 = vmatprep.subr.bf16.mxu1 %v4860_v28  ;;  %v64_v18 = vld [vmem:[#allocation2 + $0xa8] sm:$0xff]  ;;  %v5529_v23 = vpack.c.bf16 %v68_v15, %v60_v14  ;;  %v67_v27 = vld [vmem:[#allocation2 + $0xc0] sm:$0xff] }
  0x43   :  { %2811 = vmatprep.subr.bf16.mxu0 %v4862_v29  ;;  %v72_v19 = vld [vmem:[#allocation2 + $0xe8] sm:$0xff]  ;;  %v63_v28 = vld [vmem:[#allocation2 + $0xa0] sm:$0xff] }
  0x44   :  { %v4922_v20 = vld [vmem:[#allocation5 + $0x334] ss:$24 sps:$4 sm:$0xff]   ;;  %v4920_v22 = vld [vmem:[#allocation5 + $0x330] ss:$24 sps:$4 sm:$0xff]   ;;  %v5531_v24 = vpack.c.bf16 %v72_v19, %v64_v18  ;;  %v71_v29 = vld [vmem:[#allocation2 + $0xe0] sm:$0xff] }
  0x45   :  { %2586 = vmatpush1.bf16.msra.mxu1 %v4864_v30  ;;  %v4925_v21 = vld [vmem:[#allocation5 + $0x934] ss:$24 sps:$4 sm:$0xff]   ;;  %v4923_v25 = vld [vmem:[#allocation5 + $0x930] ss:$24 sps:$4 sm:$0xff]   ;;  %v4928_v30 = vld [vmem:[#allocation5 + $0x364] ss:$24 sps:$4 sm:$0xff]  }
  0x46   :  { %2812 = vmatpush1.bf16.msra.mxu0 %v4865_v31  ;;  %2587 = vmatprep.subr.bf16.mxu1 %v4866_v32  ;;  %v4931_v31 = vld [vmem:[#allocation5 + $0x964] ss:$24 sps:$4 sm:$0xff]   ;;  %v4926_v32 = vld [vmem:[#allocation5 + $0x360] ss:$24 sps:$4 sm:$0xff]   ;;  %v112_v18 = vld [vmem:[#allocation2 + $0x228] sm:$0xff] }
  0x47   :  { %2813 = vmatprep.subr.bf16.mxu0 %v4868_v33  ;;  %v4929_v33 = vld [vmem:[#allocation5 + $0x960] ss:$24 sps:$4 sm:$0xff]   ;;  %v4952_v8 = vld [vmem:[#allocation5 + $0x424] ss:$24 sps:$4 sm:$0xff]   ;;  %v120_v19 = vld [vmem:[#allocation2 + $0x268] sm:$0xff] }
  0x48   :  { %v75_v46 = vld [vmem:[#allocation2 + $0x100] sm:$0xff] }
  0x49   :  { %2588 = vmatpush1.bf16.msra.mxu1 %v4870_v34  ;;  %v76_v34 = vld [vmem:[#allocation2 + $0x108] sm:$0xff]  ;;  %v83_v47 = vld [vmem:[#allocation2 + $0x140] sm:$0xff] }
  0x4a   :  { %2814 = vmatpush1.bf16.msra.mxu0 %v4871_v35  ;;  %2589 = vmatprep.subr.bf16.mxu1 %v4872_v36  ;;  %v84_v35 = vld [vmem:[#allocation2 + $0x148] sm:$0xff]  ;;  %v5537_v36 = vpack.c.bf16 %v67_v27, %v59_v26  ;;  %v79_v48 = vld [vmem:[#allocation2 + $0x120] sm:$0xff]  ;;  %v5567_v26 = vpack.c.bf16 %v120_v19, %v112_v18 }
  0x4b   :  { %2815 = vmatprep.subr.bf16.mxu0 %v4874_v37  ;;  %v5539_v37 = vpack.c.bf16 %v71_v29, %v63_v28  ;;  %v87_v49 = vld [vmem:[#allocation2 + $0x160] sm:$0xff]  ;;  %v4959_v27 = vld [vmem:[#allocation5 + $0xa50] ss:$24 sps:$4 sm:$0xff]  }
  0x4c   :  { %v95_v6 = vld [vmem:[#allocation2 + $0x1a0] sm:$0xff] }
  0x4d   :  { %2590 = vmatpush1.bf16.msra.mxu1 %v4876_v38  ;;  %v80_v38 = vld [vmem:[#allocation2 + $0x128] sm:$0xff]  ;;  %v103_v7 = vld [vmem:[#allocation2 + $0x1e0] sm:$0xff] }
  0x4e   :  { %2816 = vmatpush1.bf16.msra.mxu0 %v4877_v39  ;;  %2591 = vmatprep.subr.bf16.mxu1 %v4878_v40  ;;  %v88_v39 = vld [vmem:[#allocation2 + $0x168] sm:$0xff]  ;;  %v4955_v9 = vld [vmem:[#allocation5 + $0xa24] ss:$24 sps:$4 sm:$0xff]   ;;  %v5563_v15 = vpack.c.bf16 %v103_v7, %v95_v6 }
  0x4f   :  { %2817 = vmatprep.subr.bf16.mxu0 %v4880_v41  ;;  %v4934_v40 = vld [vmem:[#allocation5 + $0x394] ss:$24 sps:$4 sm:$0xff]   ;;  %v107_v28 = vld [vmem:[#allocation2 + $0x200] sm:$0xff] }
  0x50   :  { %v4937_v41 = vld [vmem:[#allocation5 + $0x994] ss:$24 sps:$4 sm:$0xff]   ;;  %v115_v29 = vld [vmem:[#allocation2 + $0x240] sm:$0xff] }
  0x51   :  { %2592 = vmatpush1.bf16.msra.mxu1 %v4882_v42  ;;  %v4932_v42 = vld [vmem:[#allocation5 + $0x390] ss:$24 sps:$4 sm:$0xff]   ;;  %v139_v18 = vld [vmem:[#allocation2 + $0x300] sm:$0xff] }
  0x52   :  { %2818 = vmatpush1.bf16.msra.mxu0 %v4883_v43  ;;  %2593 = vmatprep.subr.bf16.mxu1 %v4884_v44  ;;  %v5541_v43 = vpack.c.bf16 %v84_v35, %v76_v34  ;;  %v5543_v44 = vpack.c.bf16 %v88_v39, %v80_v38  ;;  %v4962_v34 = vld [vmem:[#allocation5 + $0x480] ss:$24 sps:$4 sm:$0xff]   ;;  %v124_v38 = vld [vmem:[#allocation2 + $0x288] sm:$0xff] }
  0x53   :  { %2819 = vmatprep.subr.bf16.mxu0 %v4886_v45  ;;  %v4935_v45 = vld [vmem:[#allocation5 + $0x990] ss:$24 sps:$4 sm:$0xff]   ;;  %v4965_v35 = vld [vmem:[#allocation5 + $0xa80] ss:$24 sps:$4 sm:$0xff]  }
  0x54   :  { %v132_v39 = vld [vmem:[#allocation2 + $0x2c8] sm:$0xff]  ;;  %v147_v19 = vld [vmem:[#allocation2 + $0x340] sm:$0xff] }
  0x55   :  { %2594 = vmatpush1.bf16.msra.mxu1 %v4888_v50  ;;  %v4940_v50 = vld [vmem:[#allocation5 + $0x3c4] ss:$24 sps:$4 sm:$0xff]   ;;  %v144_v6 = vld [vmem:[#allocation2 + $0x328] sm:$0xff] }
  0x56   :  { %2820 = vmatpush1.bf16.msra.mxu0 %v4889_v51  ;;  %2595 = vmatprep.subr.bf16.mxu1 %v4890_v54  ;;  %v4943_v51 = vld [vmem:[#allocation5 + $0x9c4] ss:$24 sps:$4 sm:$0xff]   ;;  %v4938_v54 = vld [vmem:[#allocation5 + $0x3c0] ss:$24 sps:$4 sm:$0xff]   ;;  %v152_v7 = vld [vmem:[#allocation2 + $0x368] sm:$0xff] }
  0x57   :  { %2821 = vmatprep.subr.bf16.mxu0 %v4892_v55  ;;  %v4941_v55 = vld [vmem:[#allocation5 + $0x9c0] ss:$24 sps:$4 sm:$0xff]  }
  0x59   :  { %2596 = vmatpush1.bf16.msra.mxu1 %v4894_v56  ;;  %v92_v56 = vld [vmem:[#allocation2 + $0x188] sm:$0xff] }
  0x5a   :  { %2822 = vmatpush1.bf16.msra.mxu0 %v4895_v57  ;;  %2597 = vmatprep.subr.bf16.mxu1 %v4896_v58  ;;  %v100_v57 = vld [vmem:[#allocation2 + $0x1c8] sm:$0xff]  ;;  %v5549_v58 = vpack.c.bf16 %v83_v47, %v75_v46 }
  0x5b   :  { %2823 = vmatprep.subr.bf16.mxu0 %v4898_v59  ;;  %v5551_v59 = vpack.c.bf16 %v87_v49, %v79_v48  ;;  %v4970_v46 = vld [vmem:[#allocation5 + $0x4b4] ss:$24 sps:$4 sm:$0xff]   ;;  %v4968_v48 = vld [vmem:[#allocation5 + $0x4b0] ss:$24 sps:$4 sm:$0xff]   ;;  %v5577_v49 = vpack.c.bf16 %v132_v39, %v124_v38 }
  0x5c   :  { %v4973_v47 = vld [vmem:[#allocation5 + $0xab4] ss:$24 sps:$4 sm:$0xff]  }
  0x5d   :  { %2598 = vmatpush1.bf16.msra.mxu1 %v4900_v60  ;;  %v96_v60 = vld [vmem:[#allocation2 + $0x1a8] sm:$0xff] }
  0x5e   :  { %2824 = vmatpush1.bf16.msra.mxu0 %v4901_v61  ;;  %2599 = vmatprep.subr.bf16.mxu1 %v4902_v62  ;;  %v104_v61 = vld [vmem:[#allocation2 + $0x1e8] sm:$0xff] }
  0x5f   :  { %2825 = vmatprep.subr.bf16.mxu0 %v4904_v63  ;;  %v4946_v62 = vld [vmem:[#allocation5 + $0x3f4] ss:$24 sps:$4 sm:$0xff]  }
  0x60   :  { %v4949_v63 = vld [vmem:[#allocation5 + $0x9f4] ss:$24 sps:$4 sm:$0xff]  }
  0x61   :  { %2600 = vmatpush1.bf16.msra.mxu1 %v4906_v0  ;;  %v4944_v0 = vld [vmem:[#allocation5 + $0x3f0] ss:$24 sps:$4 sm:$0xff]   ;;  %v4994_v38 = vld [vmem:[#allocation5 + $0x574] ss:$24 sps:$4 sm:$0xff]  }
  0x62   :  { %2826 = vmatpush1.bf16.msra.mxu0 %v4907_v1  ;;  %2601 = vmatprep.subr.bf16.mxu1 %v4908_v2  ;;  %v5553_v1 = vpack.c.bf16 %v100_v57, %v92_v56  ;;  %v5555_v2 = vpack.c.bf16 %v104_v61, %v96_v60  ;;  %v127_v56 = vld [vmem:[#allocation2 + $0x2a0] sm:$0xff]  ;;  %v4997_v39 = vld [vmem:[#allocation5 + $0xb74] ss:$24 sps:$4 sm:$0xff]  }
  0x63   :  { %2827 = vmatprep.subr.bf16.mxu0 %v4910_v3  ;;  %v4947_v3 = vld [vmem:[#allocation5 + $0x9f0] ss:$24 sps:$4 sm:$0xff]   ;;  %v135_v57 = vld [vmem:[#allocation2 + $0x2e0] sm:$0xff] }
  0x64   :  { %v4976_v60 = vld [vmem:[#allocation5 + $0x4e4] ss:$24 sps:$4 sm:$0xff]  }
  0x65   :  { %2602 = vmatpush1.bf16.msra.mxu1 %v4912_v4  ;;  %v91_v4 = vld [vmem:[#allocation2 + $0x180] sm:$0xff] }
  0x66   :  { %2828 = vmatpush1.bf16.msra.mxu0 %v4913_v5  ;;  %2684 = vmatprep.subr.bf16.mxu1 %v4916_v10  ;;  %v99_v5 = vld [vmem:[#allocation2 + $0x1c0] sm:$0xff] }
  0x67   :  { %2910 = vmatprep.subr.bf16.mxu0 %v4919_v11  ;;  %v4950_v10 = vld [vmem:[#allocation5 + $0x420] ss:$24 sps:$4 sm:$0xff]   ;;  %v5561_v14 = vpack.c.bf16 %v99_v5, %v91_v4  ;;  %v4979_v61 = vld [vmem:[#allocation5 + $0xae4] ss:$24 sps:$4 sm:$0xff]   ;;  %v5587_v5 = vpack.c.bf16 %v135_v57, %v127_v56 }
  0x68   :  { %2604 = vmatmul.mubr.bf16.vlgmr.msra.gmra.mrb[0].mxu1 %v5525_v16  ;;  %v4953_v11 = vld [vmem:[#allocation5 + $0xa20] ss:$24 sps:$4 sm:$0xff]   ;;  %v5003_v57 = vld [vmem:[#allocation5 + $0xba4] ss:$24 sps:$4 sm:$0xff]  }
  0x69   :  { %2830 = vmatmul.mubr.bf16.vlgmr.msra.gmra.mrb[0].mxu0 %v5527_v17  ;;  %2685 = vmatpush1.bf16.msra.mxu1 %v4914_v12  ;;  %v108_v12 = vld [vmem:[#allocation2 + $0x208] sm:$0xff]  ;;  %6018 = vst [vmem:[#allocation11_spill] sm:$0xff] %v5587_v5  ;;  %v167_v56 = vld [vmem:[#allocation2 + $0x3e0] sm:$0xff] }
  0x6a   :  { %2911 = vmatpush1.bf16.msra.mxu0 %v4917_v13  ;;  %2686 = vmatprep.subr.bf16.mxu1 %v4922_v20  ;;  %v116_v13 = vld [vmem:[#allocation2 + $0x248] sm:$0xff] }
  0x6b   :  { %2912 = vmatprep.subr.bf16.mxu0 %v4925_v21  ;;  %2613 = vmatprep.mubr.bf16.mxu1 %v5529_v23  ;;  %v4958_v20 = vld [vmem:[#allocation5 + $0x454] ss:$24 sps:$4 sm:$0xff]  }
  0x6c   :  { %2839 = vmatprep.mubr.bf16.mxu0 %v5531_v24  ;;  %v4961_v21 = vld [vmem:[#allocation5 + $0xa54] ss:$24 sps:$4 sm:$0xff]  }
  0x6d   :  { %2687 = vmatpush1.bf16.msra.mxu1 %v4920_v22  ;;  %v4956_v22 = vld [vmem:[#allocation5 + $0x450] ss:$24 sps:$4 sm:$0xff]  }
  0x6e   :  { %2913 = vmatpush1.bf16.msra.mxu0 %v4923_v25  ;;  %2688 = vmatprep.subr.bf16.mxu1 %v4928_v30  ;;  %v5565_v25 = vpack.c.bf16 %v116_v13, %v108_v12  ;;  %v111_v30 = vld [vmem:[#allocation2 + $0x220] sm:$0xff]  ;;  %v5591_v12 = vpack.c.bf16 %v152_v7, %v144_v6  ;;  %v4983_v13 = vld [vmem:[#allocation5 + $0xb10] ss:$24 sps:$4 sm:$0xff]   ;;  %v50_v6 = vld [vmem:[#allocation2 + $0x38] sm:$0xff] }
  0x6f   :  { %2914 = vmatprep.subr.bf16.mxu0 %v4931_v31  ;;  %v119_v31 = vld [vmem:[#allocation2 + $0x260] sm:$0xff]  ;;  %v58_v7 = vld [vmem:[#allocation2 + $0x78] sm:$0xff] }
  0x70   :  { %2614 = vmatmul.mubr.bf16.gmra.mrb[4].mxu1 %v5537_v36  ;;  %6019 = vst [vmem:[#allocation12_spill] sm:$0xff] %v5591_v12 }
  0x71   :  { %2840 = vmatmul.mubr.bf16.gmra.mrb[4].mxu0 %v5539_v37  ;;  %2689 = vmatpush1.bf16.msra.mxu1 %v4926_v32  ;;  %v4964_v32 = vld [vmem:[#allocation5 + $0x484] ss:$24 sps:$4 sm:$0xff]  }
  0x72   :  { %2915 = vmatpush1.bf16.msra.mxu0 %v4929_v33  ;;  %2690 = vmatprep.subr.bf16.mxu1 %v4934_v40  ;;  %v4967_v33 = vld [vmem:[#allocation5 + $0xa84] ss:$24 sps:$4 sm:$0xff]   ;;  %v5573_v40 = vpack.c.bf16 %v115_v29, %v107_v28  ;;  %v4986_v28 = vld [vmem:[#allocation5 + $0x540] ss:$24 sps:$4 sm:$0xff]  }
  0x73   :  { %2916 = vmatprep.subr.bf16.mxu0 %v4937_v41  ;;  %2623 = vmatprep.mubr.bf16.mxu1 %v5541_v43  ;;  %v5575_v41 = vpack.c.bf16 %v119_v31, %v111_v30  ;;  %v4989_v29 = vld [vmem:[#allocation5 + $0xb40] ss:$24 sps:$4 sm:$0xff]   ;;  %v156_v30 = vld [vmem:[#allocation2 + $0x388] sm:$0xff] }
  0x74   :  { %2849 = vmatprep.mubr.bf16.mxu0 %v5543_v44  ;;  %v164_v31 = vld [vmem:[#allocation2 + $0x3c8] sm:$0xff] }
  0x75   :  { %2691 = vmatpush1.bf16.msra.mxu1 %v4932_v42  ;;  %v128_v42 = vld [vmem:[#allocation2 + $0x2a8] sm:$0xff] }
  0x76   :  { %2917 = vmatpush1.bf16.msra.mxu0 %v4935_v45  ;;  %2692 = vmatprep.subr.bf16.mxu1 %v4940_v50  ;;  %v136_v45 = vld [vmem:[#allocation2 + $0x2e8] sm:$0xff] }
  0x77   :  { %2918 = vmatprep.subr.bf16.mxu0 %v4943_v51  ;;  %v5579_v50 = vpack.c.bf16 %v136_v45, %v128_v42  ;;  %v4971_v51 = vld [vmem:[#allocation5 + $0xab0] ss:$24 sps:$4 sm:$0xff]   ;;  %v5601_v45 = vpack.c.bf16 %v164_v31, %v156_v30 }
  0x78   :  { %2624 = vmatmul.mubr.bf16.gmra.mrb[8].mxu1 %v5549_v58  ;;  %v4992_v42 = vld [vmem:[#allocation5 + $0x570] ss:$24 sps:$4 sm:$0xff]  }
  0x79   :  { %2850 = vmatmul.mubr.bf16.gmra.mrb[8].mxu0 %v5551_v59  ;;  %2693 = vmatpush1.bf16.msra.mxu1 %v4938_v54  ;;  %v123_v54 = vld [vmem:[#allocation2 + $0x280] sm:$0xff]  ;;  %v5013_v31 = vld [vmem:[#allocation5 + $0x10] ss:$24 sps:$4 sm:$0xff]  }
  0x7a   :  { %2919 = vmatpush1.bf16.msra.mxu0 %v4941_v55  ;;  %2694 = vmatprep.subr.bf16.mxu1 %v4946_v62  ;;  %v131_v55 = vld [vmem:[#allocation2 + $0x2c0] sm:$0xff] }
  0x7b   :  { %2920 = vmatprep.subr.bf16.mxu0 %v4949_v63  ;;  %2633 = vmatprep.mubr.bf16.mxu1 %v5553_v1  ;;  %v4974_v62 = vld [vmem:[#allocation5 + $0x4e0] ss:$24 sps:$4 sm:$0xff]   ;;  %v5585_v4 = vpack.c.bf16 %v131_v55, %v123_v54  ;;  %v5000_v54 = vld [vmem:[#allocation5 + $0x5a4] ss:$24 sps:$4 sm:$0xff]  }
  0x7c   :  { %2859 = vmatprep.mubr.bf16.mxu0 %v5555_v2  ;;  %v4977_v63 = vld [vmem:[#allocation5 + $0xae0] ss:$24 sps:$4 sm:$0xff]  }
  0x7d   :  { %2695 = vmatpush1.bf16.msra.mxu1 %v4944_v0  ;;  %v140_v0 = vld [vmem:[#allocation2 + $0x308] sm:$0xff]  ;;  %v159_v55 = vld [vmem:[#allocation2 + $0x3a0] sm:$0xff] }
  0x7e   :  { %2921 = vmatpush1.bf16.msra.mxu0 %v4947_v3  ;;  %2696 = vmatprep.subr.bf16.mxu1 %v4952_v8  ;;  %v148_v3 = vld [vmem:[#allocation2 + $0x348] sm:$0xff] }
  0x7f   :  { %2922 = vmatprep.subr.bf16.mxu0 %v4955_v9  ;;  %v4982_v8 = vld [vmem:[#allocation5 + $0x514] ss:$24 sps:$4 sm:$0xff]   ;;  %v5010_v30 = vld [vmem:[#allocation5 + $0x8] ss:$24 sps:$4 sm:$0xff]  }
  0x80   :  { %2634 = vmatmul.mubr.bf16.gmra.mrb[12].mxu1 %v5561_v14  ;;  %v4985_v9 = vld [vmem:[#allocation5 + $0xb14] ss:$24 sps:$4 sm:$0xff]  }
  0x81   :  { %2860 = vmatmul.mubr.bf16.gmra.mrb[12].mxu0 %v5563_v15  ;;  %2697 = vmatpush1.bf16.msra.mxu1 %v4950_v10  ;;  %v4980_v10 = vld [vmem:[#allocation5 + $0x510] ss:$24 sps:$4 sm:$0xff]  }
  0x82   :  { %2923 = vmatpush1.bf16.msra.mxu0 %v4953_v11  ;;  %2698 = vmatprep.subr.bf16.mxu1 %v4958_v20  ;;  %v5589_v11 = vpack.c.bf16 %v148_v3, %v140_v0  ;;  %v4988_v20 = vld [vmem:[#allocation5 + $0x544] ss:$24 sps:$4 sm:$0xff]   ;;  %v5611_v3 = vpack.c.bf16 %v167_v56, %v159_v55 }
  0x83   :  { %2924 = vmatprep.subr.bf16.mxu0 %v4961_v21  ;;  %2643 = vmatprep.mubr.bf16.mxu1 %v5565_v25  ;;  %v143_v21 = vld [vmem:[#allocation2 + $0x320] sm:$0xff] }
  0x84   :  { %2869 = vmatprep.mubr.bf16.mxu0 %v5567_v26  ;;  %6022 = vst [vmem:[#allocation15_spill] sm:$0xff] %v5611_v3 }
  0x85   :  { %2699 = vmatpush1.bf16.msra.mxu1 %v4956_v22  ;;  %v151_v22 = vld [vmem:[#allocation2 + $0x360] sm:$0xff] }
  0x86   :  { %2925 = vmatpush1.bf16.msra.mxu0 %v4959_v27  ;;  %2700 = vmatprep.subr.bf16.mxu1 %v4964_v32  ;;  %v4991_v27 = vld [vmem:[#allocation5 + $0xb44] ss:$24 sps:$4 sm:$0xff]   ;;  %v5597_v32 = vpack.c.bf16 %v147_v19, %v139_v18  ;;  %v5615_v18 = vpack.c.bf16 %v58_v7, %v50_v6  ;;  %v5007_v19 = vld [vmem:[#allocation5 + $0xbd0] ss:$24 sps:$4 sm:$0xff]   ;;  %v5027_v7 = vld [vmem:[#allocation5 + $0x74] ss:$24 sps:$4 sm:$0xff]  }
  0x87   :  { %2926 = vmatprep.subr.bf16.mxu0 %v4967_v33  ;;  %v5599_v33 = vpack.c.bf16 %v151_v22, %v143_v21  ;;  %v53_v21 = vld [vmem:[#allocation2 + $0x50] sm:$0xff]  ;;  %v5024_v6 = vld [vmem:[#allocation5 + $0x6c] ss:$24 sps:$4 sm:$0xff]  }
  0x88   :  { %2644 = vmatmul.mubr.bf16.gmra.mrb[16].mxu1 %v5573_v40  ;;  %6023 = vst [vmem:[#allocation16_spill] sm:$0xff] %v5615_v18  ;;  %v49_v22 = vld [vmem:[#allocation2 + $0x30] sm:$0xff] }
  0x89   :  { %2870 = vmatmul.mubr.bf16.gmra.mrb[16].mxu0 %v5575_v41  ;;  %2701 = vmatpush1.bf16.msra.mxu1 %v4962_v34  ;;  %6020 = vst [vmem:[#allocation13_spill] sm:$0xff] %v5599_v33  ;;  %v160_v34 = vld [vmem:[#allocation2 + $0x3a8] sm:$0xff] }
  0x8a   :  { %2927 = vmatpush1.bf16.msra.mxu0 %v4965_v35  ;;  %2702 = vmatprep.subr.bf16.mxu1 %v4970_v46  ;;  %v168_v35 = vld [vmem:[#allocation2 + $0x3e8] sm:$0xff] }
  0x8b   :  { %2928 = vmatprep.subr.bf16.mxu0 %v4973_v47  ;;  %2653 = vmatprep.mubr.bf16.mxu1 %v5577_v49  ;;  %v5603_v46 = vpack.c.bf16 %v168_v35, %v160_v34  ;;  %v4995_v47 = vld [vmem:[#allocation5 + $0xb70] ss:$24 sps:$4 sm:$0xff]   ;;  %v62_v34 = vld [vmem:[#allocation2 + $0x98] sm:$0xff] }
  0x8c   :  { %2879 = vmatprep.mubr.bf16.mxu0 %v5579_v50  ;;  %v70_v35 = vld [vmem:[#allocation2 + $0xd8] sm:$0xff] }
  0x8d   :  { %2703 = vmatpush1.bf16.msra.mxu1 %v4968_v48  ;;  %6021 = vst [vmem:[#allocation14_spill] sm:$0xff] %v5603_v46  ;;  %v155_v48 = vld [vmem:[#allocation2 + $0x380] sm:$0xff]  ;;  %v5625_v55 = vpack.c.bf16 %v70_v35, %v62_v34 }
  0x8e   :  { %2929 = vmatpush1.bf16.msra.mxu0 %v4971_v51  ;;  %2704 = vmatprep.subr.bf16.mxu1 %v4976_v60  ;;  %v163_v51 = vld [vmem:[#allocation2 + $0x3c0] sm:$0xff] }
  0x8f   :  { %2930 = vmatprep.subr.bf16.mxu0 %v4979_v61  ;;  %v4998_v60 = vld [vmem:[#allocation5 + $0x5a0] ss:$24 sps:$4 sm:$0xff]   ;;  %v5609_v0 = vpack.c.bf16 %v163_v51, %v155_v48  ;;  %v5018_v48 = vld [vmem:[#allocation5 + $0x3c] ss:$24 sps:$4 sm:$0xff]  }
  0x90   :  { %2654 = vmatmul.mubr.bf16.gmra.mrb[20].mxu1 %v5585_v4  ;;  %v5001_v61 = vld [vmem:[#allocation5 + $0xba0] ss:$24 sps:$4 sm:$0xff]   ;;  %v5021_v51 = vld [vmem:[#allocation5 + $0x44] ss:$24 sps:$4 sm:$0xff]  }
  0x91   :  { %2880 = vmatmul.mubr.bf16.gmra.mrb[20].mxu0 %v5587_v5  ;;  %2705 = vmatpush1.bf16.msra.mxu1 %v4974_v62  ;;  %v46_v62 = vld [vmem:[#allocation2 + $0x18] sm:$0xff]  ;;  %v165_v5 = vld [vmem:[#allocation2 + $0x3d0] sm:$0xff] }
  0x92   :  { %2931 = vmatpush1.bf16.msra.mxu0 %v4977_v63  ;;  %2706 = vmatprep.subr.bf16.mxu1 %v4982_v8  ;;  %v54_v63 = vld [vmem:[#allocation2 + $0x58] sm:$0xff]  ;;  %v5006_v8 = vld [vmem:[#allocation5 + $0x5d4] ss:$24 sps:$4 sm:$0xff]  }
  0x93   :  { %2932 = vmatprep.subr.bf16.mxu0 %v4985_v9  ;;  %2663 = vmatprep.mubr.bf16.mxu1 %v5589_v11  ;;  %v5009_v9 = vld [vmem:[#allocation5 + $0xbd4] ss:$24 sps:$4 sm:$0xff]   ;;  %v5031_v35 = vld [vmem:[#allocation5 + $0xa0] ss:$24 sps:$4 sm:$0xff]  }
  0x94   :  { %2889 = vmatprep.mubr.bf16.mxu0 %v5591_v12  ;;  %v157_v12 = vld [vmem:[#allocation2 + $0x390] sm:$0xff] }
  0x95   :  { %2707 = vmatpush1.bf16.msra.mxu1 %v4980_v10  ;;  %v5004_v10 = vld [vmem:[#allocation5 + $0x5d0] ss:$24 sps:$4 sm:$0xff]  }
  0x96   :  { %2933 = vmatpush1.bf16.msra.mxu0 %v4983_v13  ;;  %2708 = vmatprep.subr.bf16.mxu1 %v4988_v20  ;;  %v5613_v13 = vpack.c.bf16 %v54_v63, %v46_v62  ;;  %v45_v20 = vld [vmem:[#allocation2 + $0x10] sm:$0xff] }
  0x97   :  { %2934 = vmatprep.subr.bf16.mxu0 %v4991_v27  ;;  %v57_v27 = vld [vmem:[#allocation2 + $0x70] sm:$0xff] }
  0x98   :  { %2664 = vmatmul.mubr.bf16.gmra.mrb[24].mxu1 %v5597_v32  ;;  %v65_v62 = vld [vmem:[#allocation2 + $0xb0] sm:$0xff] }
  0x99   :  { %2890 = vmatmul.mubr.bf16.gmra.mrb[24].mxu0 %v5599_v33  ;;  %2709 = vmatpush1.bf16.msra.mxu1 %v4986_v28  ;;  %v5012_v28 = vld [vmem:[#allocation5 + $0xc] ss:$24 sps:$4 sm:$0xff]   ;;  %v73_v63 = vld [vmem:[#allocation2 + $0xf0] sm:$0xff] }
  0x9a   :  { %2935 = vmatpush1.bf16.msra.mxu0 %v4989_v29  ;;  %2710 = vmatprep.subr.bf16.mxu1 %v4994_v38  ;;  %v5015_v29 = vld [vmem:[#allocation5 + $0x14] ss:$24 sps:$4 sm:$0xff]   ;;  %v5621_v38 = vpack.c.bf16 %v53_v21, %v45_v20  ;;  %v5635_v21 = vpack.c.bf16 %v73_v63, %v65_v62  ;;  %v94_v62 = vld [vmem:[#allocation2 + $0x198] sm:$0xff] }
  0x9b   :  { %2936 = vmatprep.subr.bf16.mxu0 %v4997_v39  ;;  %2673 = vmatprep.mubr.bf16.mxu1 %v5601_v45  ;;  %v5623_v39 = vpack.c.bf16 %v57_v27, %v49_v22  ;;  %v82_v22 = vld [vmem:[#allocation2 + $0x138] sm:$0xff]  ;;  %v149_v33 = vld [vmem:[#allocation2 + $0x350] sm:$0xff] }
  0x9c   :  { %2899 = vmatprep.mubr.bf16.mxu0 %v5603_v46  ;;  %6026 = vst [vmem:[#allocation19_spill] sm:$0xff] %v5635_v21  ;;  %v90_v27 = vld [vmem:[#allocation2 + $0x178] sm:$0xff]  ;;  %v141_v46 = vld [vmem:[#allocation2 + $0x310] sm:$0xff] }
  0x9d   :  { %2711 = vmatpush1.bf16.msra.mxu1 %v4992_v42  ;;  %6024 = vst [vmem:[#allocation17_spill] sm:$0xff] %v5623_v39  ;;  %v66_v42 = vld [vmem:[#allocation2 + $0xb8] sm:$0xff]  ;;  %v5639_v34 = vpack.c.bf16 %v90_v27, %v82_v22 }
  0x9e   :  { %2937 = vmatpush1.bf16.msra.mxu0 %v4995_v47  ;;  %2712 = vmatprep.subr.bf16.mxu1 %v5000_v54  ;;  %v74_v47 = vld [vmem:[#allocation2 + $0xf8] sm:$0xff] }
  0x9f   :  { %2938 = vmatprep.subr.bf16.mxu0 %v5003_v57  ;;  %v5016_v54 = vld [vmem:[#allocation5 + $0x38] ss:$24 sps:$4 sm:$0xff]   ;;  %v5627_v56 = vpack.c.bf16 %v74_v47, %v66_v42  ;;  %6027 = vst [vmem:[#allocation20_spill] sm:$0xff] %v5639_v34 }
  0xa0   :  { %2674 = vmatmul.mubr.bf16.gmra.mrb[28].mxu1 %v5609_v0  ;;  %v5019_v57 = vld [vmem:[#allocation5 + $0x40] ss:$24 sps:$4 sm:$0xff]   ;;  %v77_v42 = vld [vmem:[#allocation2 + $0x110] sm:$0xff] }
  0xa1   :  { %2900 = vmatmul.mubr.bf16.gmra.mrb[28].mxu0 %v5611_v3  ;;  %2713 = vmatpush1.bf16.msra.mxu1 %v4998_v60  ;;  %6025 = vst [vmem:[#allocation18_spill] sm:$0xff] %v5627_v56  ;;  %v61_v60 = vld [vmem:[#allocation2 + $0x90] sm:$0xff]  ;;  %v102_v63 = vld [vmem:[#allocation2 + $0x1d8] sm:$0xff] }
  0xa2   :  { %2939 = vmatpush1.bf16.msra.mxu0 %v5001_v61  ;;  %2714 = vmatprep.subr.bf16.mxu1 %v5006_v8  ;;  %v69_v61 = vld [vmem:[#allocation2 + $0xd0] sm:$0xff]  ;;  %v5022_v8 = vld [vmem:[#allocation5 + $0x68] ss:$24 sps:$4 sm:$0xff]   ;;  %v5649_v27 = vpack.c.bf16 %v102_v63, %v94_v62  ;;  %v110_v62 = vld [vmem:[#allocation2 + $0x218] sm:$0xff] }
  0xa3   :  { %2940 = vmatprep.subr.bf16.mxu0 %v5009_v9  ;;  %2716 = vmatprep.mubr.bf16.mxu1 %v5613_v13  ;;  %v5025_v9 = vld [vmem:[#allocation5 + $0x70] ss:$24 sps:$4 sm:$0xff]   ;;  %v5633_v20 = vpack.c.bf16 %v69_v61, %v61_v60  ;;  %v118_v63 = vld [vmem:[#allocation2 + $0x258] sm:$0xff] }
  0xa4   :  { %2942 = vmatprep.mubr.bf16.mxu0 %v5615_v18  ;;  %v85_v47 = vld [vmem:[#allocation2 + $0x150] sm:$0xff]  ;;  %v5034_v60 = vld [vmem:[#allocation5 + $0xc8] ss:$24 sps:$4 sm:$0xff]  }
  0xa5   :  { %2715 = vmatpush1.bf16.msra.mxu1 %v5004_v10  ;;  %v78_v10 = vld [vmem:[#allocation2 + $0x118] sm:$0xff]  ;;  %v5037_v61 = vld [vmem:[#allocation5 + $0xd0] ss:$24 sps:$4 sm:$0xff]  }
  0xa6   :  { %2941 = vmatpush1.bf16.msra.mxu0 %v5007_v19  ;;  %3023 = vmatprep.subr.bf16.mxu1 %v5012_v28  ;;  %v86_v19 = vld [vmem:[#allocation2 + $0x158] sm:$0xff] }
  0xa7   :  { %3475 = vmatprep.subr.bf16.mxu0 %v5015_v29  ;;  %v5030_v28 = vld [vmem:[#allocation5 + $0x9c] ss:$24 sps:$4 sm:$0xff]   ;;  %v5040_v22 = vld [vmem:[#allocation5 + $0xf8] ss:$24 sps:$4 sm:$0xff]  }
  0xa8   :  { %2717 = vmatmul.mubr.bf16.vlgmr.msra.gmra.mrb[0].mxu1 %v5621_v38  ;;  %v5033_v29 = vld [vmem:[#allocation5 + $0xa4] ss:$24 sps:$4 sm:$0xff]   ;;  %v5079_v18 = vld [vmem:[#allocation5 + $0x220] ss:$24 sps:$4 sm:$0xff]  }
  0xa9   :  { %2943 = vmatmul.mubr.bf16.vlgmr.msra.gmra.mrb[0].mxu0 %v5623_v39  ;;  %3024 = vmatpush1.bf16.msra.mxu1 %v5010_v30  ;;  %v5028_v30 = vld [vmem:[#allocation5 + $0x98] ss:$24 sps:$4 sm:$0xff]   ;;  %v5078_v39 = vld [vmem:[#allocation5 + $0x21c] ss:$24 sps:$4 sm:$0xff]  }
  0xaa   :  { %3476 = vmatpush1.bf16.msra.mxu0 %v5013_v31  ;;  %3025 = vmatprep.subr.bf16.mxu1 %v5018_v48  ;;  %v5637_v31 = vpack.c.bf16 %v86_v19, %v78_v10  ;;  %v81_v48 = vld [vmem:[#allocation2 + $0x130] sm:$0xff]  ;;  %v5045_v19 = vld [vmem:[#allocation5 + $0x104] ss:$24 sps:$4 sm:$0xff]  }
  0xab   :  { %3477 = vmatprep.subr.bf16.mxu0 %v5021_v51  ;;  %2726 = vmatprep.mubr.bf16.mxu1 %v5625_v55  ;;  %v89_v51 = vld [vmem:[#allocation2 + $0x170] sm:$0xff] }
  0xac   :  { %2952 = vmatprep.mubr.bf16.mxu0 %v5627_v56  ;;  %v5042_v10 = vld [vmem:[#allocation5 + $0xfc] ss:$24 sps:$4 sm:$0xff]  }
  0xad   :  { %3026 = vmatpush1.bf16.msra.mxu1 %v5016_v54  ;;  %v5036_v54 = vld [vmem:[#allocation5 + $0xcc] ss:$24 sps:$4 sm:$0xff]  }
  0xae   :  { %3478 = vmatpush1.bf16.msra.mxu0 %v5019_v57  ;;  %3027 = vmatprep.subr.bf16.mxu1 %v5024_v6  ;;  %v5039_v57 = vld [vmem:[#allocation5 + $0xd4] ss:$24 sps:$4 sm:$0xff]   ;;  %v5645_v6 = vpack.c.bf16 %v85_v47, %v77_v42 }
  0xaf   :  { %3479 = vmatprep.subr.bf16.mxu0 %v5027_v7  ;;  %v5647_v7 = vpack.c.bf16 %v89_v51, %v81_v48  ;;  %v93_v42 = vld [vmem:[#allocation2 + $0x190] sm:$0xff]  ;;  %v5048_v48 = vld [vmem:[#allocation5 + $0x12c] ss:$24 sps:$4 sm:$0xff]  }
  0xb0   :  { %2727 = vmatmul.mubr.bf16.gmra.mrb[4].mxu1 %v5633_v20  ;;  %v101_v47 = vld [vmem:[#allocation2 + $0x1d0] sm:$0xff] }
  0xb1   :  { %2953 = vmatmul.mubr.bf16.gmra.mrb[4].mxu0 %v5635_v21  ;;  %3028 = vmatpush1.bf16.msra.mxu1 %v5022_v8  ;;  %6028 = vst [vmem:[#allocation21_spill] sm:$0xff] %v5647_v7  ;;  %v98_v8 = vld [vmem:[#allocation2 + $0x1b8] sm:$0xff]  ;;  %v5051_v51 = vld [vmem:[#allocation5 + $0x134] ss:$24 sps:$4 sm:$0xff]  }
  0xb2   :  { %3480 = vmatpush1.bf16.msra.mxu0 %v5025_v9  ;;  %3029 = vmatprep.subr.bf16.mxu1 %v5030_v28  ;;  %v106_v9 = vld [vmem:[#allocation2 + $0x1f8] sm:$0xff] }
  0xb3   :  { %3481 = vmatprep.subr.bf16.mxu0 %v5033_v29  ;;  %2736 = vmatprep.mubr.bf16.mxu1 %v5637_v31  ;;  %v5651_v28 = vpack.c.bf16 %v106_v9, %v98_v8  ;;  %v5043_v29 = vld [vmem:[#allocation5 + $0x100] ss:$24 sps:$4 sm:$0xff]   ;;  %v5657_v8 = vpack.c.bf16 %v101_v47, %v93_v42  ;;  %v109_v47 = vld [vmem:[#allocation2 + $0x210] sm:$0xff] }
  0xb4   :  { %2962 = vmatprep.mubr.bf16.mxu0 %v5639_v34  ;;  %v5661_v34 = vpack.c.bf16 %v118_v63, %v110_v62  ;;  %v5055_v42 = vld [vmem:[#allocation5 + $0x160] ss:$24 sps:$4 sm:$0xff]   ;;  %v5061_v62 = vld [vmem:[#allocation5 + $0x190] ss:$24 sps:$4 sm:$0xff]   ;;  %v5066_v21 = vld [vmem:[#allocation5 + $0x1bc] ss:$24 sps:$4 sm:$0xff]  }
  0xb5   :  { %3030 = vmatpush1.bf16.msra.mxu1 %v5028_v30  ;;  %6029 = vst [vmem:[#allocation22_spill] sm:$0xff] %v5651_v28  ;;  %v97_v30 = vld [vmem:[#allocation2 + $0x1b0] sm:$0xff]  ;;  %v126_v63 = vld [vmem:[#allocation2 + $0x298] sm:$0xff] }
  0xb6   :  { %3482 = vmatpush1.bf16.msra.mxu0 %v5031_v35  ;;  %3031 = vmatprep.subr.bf16.mxu1 %v5036_v54  ;;  %v105_v35 = vld [vmem:[#allocation2 + $0x1f0] sm:$0xff]  ;;  %v5046_v54 = vld [vmem:[#allocation5 + $0x128] ss:$24 sps:$4 sm:$0xff]  }
  0xb7   :  { %3483 = vmatprep.subr.bf16.mxu0 %v5039_v57  ;;  %v5049_v57 = vld [vmem:[#allocation5 + $0x130] ss:$24 sps:$4 sm:$0xff]   ;;  %v5659_v9 = vpack.c.bf16 %v105_v35, %v97_v30  ;;  %v5060_v35 = vld [vmem:[#allocation5 + $0x18c] ss:$24 sps:$4 sm:$0xff]  }
  0xb8   :  { %2737 = vmatmul.mubr.bf16.gmra.mrb[8].mxu1 %v5645_v6  ;;  %v117_v30 = vld [vmem:[#allocation2 + $0x250] sm:$0xff] }
  0xb9   :  { %2963 = vmatmul.mubr.bf16.gmra.mrb[8].mxu0 %v5647_v7  ;;  %3032 = vmatpush1.bf16.msra.mxu1 %v5034_v60  ;;  %6030 = vst [vmem:[#allocation23_spill] sm:$0xff] %v5659_v9  ;;  %v114_v60 = vld [vmem:[#allocation2 + $0x238] sm:$0xff] }
  0xba   :  { %3484 = vmatpush1.bf16.msra.mxu0 %v5037_v61  ;;  %3033 = vmatprep.subr.bf16.mxu1 %v5042_v10  ;;  %v122_v61 = vld [vmem:[#allocation2 + $0x278] sm:$0xff] }
  0xbb   :  { %3485 = vmatprep.subr.bf16.mxu0 %v5045_v19  ;;  %2746 = vmatprep.mubr.bf16.mxu1 %v5649_v27  ;;  %v5054_v7 = vld [vmem:[#allocation5 + $0x15c] ss:$24 sps:$4 sm:$0xff]   ;;  %v5052_v19 = vld [vmem:[#allocation5 + $0x158] ss:$24 sps:$4 sm:$0xff]  }
  0xbc   :  { %2972 = vmatprep.mubr.bf16.mxu0 %v5651_v28  ;;  %v5057_v10 = vld [vmem:[#allocation5 + $0x164] ss:$24 sps:$4 sm:$0xff]   ;;  %v5663_v28 = vpack.c.bf16 %v122_v61, %v114_v60  ;;  %v5669_v61 = vpack.c.bf16 %v117_v30, %v109_v47  ;;  %v5067_v47 = vld [vmem:[#allocation5 + $0x1c0] ss:$24 sps:$4 sm:$0xff]   ;;  %v125_v30 = vld [vmem:[#allocation2 + $0x290] sm:$0xff] }
  0xbd   :  { %3034 = vmatpush1.bf16.msra.mxu1 %v5040_v22  ;;  %v113_v22 = vld [vmem:[#allocation2 + $0x230] sm:$0xff]  ;;  %v134_v60 = vld [vmem:[#allocation2 + $0x2d8] sm:$0xff] }
  0xbe   :  { %3486 = vmatpush1.bf16.msra.mxu0 %v5043_v29  ;;  %3035 = vmatprep.subr.bf16.mxu1 %v5048_v48  ;;  %6031 = vst [vmem:[#allocation24_spill] sm:$0xff] %v5663_v28  ;;  %v121_v29 = vld [vmem:[#allocation2 + $0x270] sm:$0xff]  ;;  %v5673_v56 = vpack.c.bf16 %v134_v60, %v126_v63  ;;  %v142_v60 = vld [vmem:[#allocation2 + $0x318] sm:$0xff] }
  0xbf   :  { %3487 = vmatprep.subr.bf16.mxu0 %v5051_v51  ;;  %v5063_v48 = vld [vmem:[#allocation5 + $0x194] ss:$24 sps:$4 sm:$0xff]   ;;  %v5058_v51 = vld [vmem:[#allocation5 + $0x188] ss:$24 sps:$4 sm:$0xff]  }
  0xc0   :  { %2747 = vmatmul.mubr.bf16.gmra.mrb[12].mxu1 %v5657_v8  ;;  %v5073_v63 = vld [vmem:[#allocation5 + $0x1f0] ss:$24 sps:$4 sm:$0xff]  }
  0xc1   :  { %2973 = vmatmul.mubr.bf16.gmra.mrb[12].mxu0 %v5659_v9  ;;  %3036 = vmatpush1.bf16.msra.mxu1 %v5046_v54  ;;  %v5671_v9 = vpack.c.bf16 %v121_v29, %v113_v22  ;;  %v130_v54 = vld [vmem:[#allocation2 + $0x2b8] sm:$0xff]  ;;  %v133_v22 = vld [vmem:[#allocation2 + $0x2d0] sm:$0xff]  ;;  %v5072_v29 = vld [vmem:[#allocation5 + $0x1ec] ss:$24 sps:$4 sm:$0xff]  }
  0xc2   :  { %3488 = vmatpush1.bf16.msra.mxu0 %v5049_v57  ;;  %3037 = vmatprep.subr.bf16.mxu1 %v5054_v7  ;;  %v138_v57 = vld [vmem:[#allocation2 + $0x2f8] sm:$0xff] }
  0xc3   :  { %3489 = vmatprep.subr.bf16.mxu0 %v5057_v10  ;;  %2756 = vmatprep.mubr.bf16.mxu1 %v5661_v34  ;;  %6032 = vst [vmem:[#allocation25_spill] sm:$0xff] %v5671_v9  ;;  %v5069_v7 = vld [vmem:[#allocation5 + $0x1c4] ss:$24 sps:$4 sm:$0xff]   ;;  %v5064_v10 = vld [vmem:[#allocation5 + $0x1b8] ss:$24 sps:$4 sm:$0xff]  }
  0xc4   :  { %2982 = vmatprep.mubr.bf16.mxu0 %v5663_v28  ;;  %v5675_v28 = vpack.c.bf16 %v138_v57, %v130_v54  ;;  %v150_v54 = vld [vmem:[#allocation2 + $0x358] sm:$0xff]  ;;  %v5681_v57 = vpack.c.bf16 %v133_v22, %v125_v30  ;;  %v145_v30 = vld [vmem:[#allocation2 + $0x330] sm:$0xff] }
  0xc5   :  { %3038 = vmatpush1.bf16.msra.mxu1 %v5052_v19  ;;  %v129_v19 = vld [vmem:[#allocation2 + $0x2b0] sm:$0xff]  ;;  %v5685_v3 = vpack.c.bf16 %v150_v54, %v142_v60  ;;  %v5693_v60 = vpack.c.bf16 %v149_v33, %v141_v46 }
  0xc6   :  { %3490 = vmatpush1.bf16.msra.mxu0 %v5055_v42  ;;  %3039 = vmatprep.subr.bf16.mxu1 %v5060_v35  ;;  %6033 = vst [vmem:[#allocation26_spill] sm:$0xff] %v5675_v28  ;;  %v137_v42 = vld [vmem:[#allocation2 + $0x2f0] sm:$0xff] }
  0xc7   :  { %3491 = vmatprep.subr.bf16.mxu0 %v5063_v48  ;;  %v5075_v35 = vld [vmem:[#allocation5 + $0x1f4] ss:$24 sps:$4 sm:$0xff]   ;;  %v5070_v48 = vld [vmem:[#allocation5 + $0x1e8] ss:$24 sps:$4 sm:$0xff]  }
  0xc8   :  { %2757 = vmatmul.mubr.bf16.gmra.mrb[16].mxu1 %v5669_v61  ;;  %v153_v22 = vld [vmem:[#allocation2 + $0x370] sm:$0xff] }
  0xc9   :  { %2983 = vmatmul.mubr.bf16.gmra.mrb[16].mxu0 %v5671_v9  ;;  %3040 = vmatpush1.bf16.msra.mxu1 %v5058_v51  ;;  %v5683_v9 = vpack.c.bf16 %v137_v42, %v129_v19  ;;  %v146_v51 = vld [vmem:[#allocation2 + $0x338] sm:$0xff]  ;;  %v5082_v19 = vld [vmem:[#allocation5 + $0x248] ss:$24 sps:$4 sm:$0xff]   ;;  %v5695_v54 = vpack.c.bf16 %v153_v22, %v145_v30  ;;  %v161_v33 = vld [vmem:[#allocation2 + $0x3b0] sm:$0xff]  ;;  %v5705_v30 = vpack.c.bf16 %v165_v5, %v157_v12 }
  0xca   :  { %3492 = vmatpush1.bf16.msra.mxu0 %v5061_v62  ;;  %3041 = vmatprep.subr.bf16.mxu1 %v5066_v21  ;;  %v154_v62 = vld [vmem:[#allocation2 + $0x378] sm:$0xff]  ;;  %v5085_v42 = vld [vmem:[#allocation5 + $0x250] ss:$24 sps:$4 sm:$0xff]   ;;  %v5108_v5 = vld [vmem:[#allocation5 + $0x30c] ss:$24 sps:$4 sm:$0xff]  }
  0xcb   :  { %3493 = vmatprep.subr.bf16.mxu0 %v5069_v7  ;;  %2766 = vmatprep.mubr.bf16.mxu1 %v5673_v56  ;;  %6034 = vst [vmem:[#allocation27_spill] sm:$0xff] %v5683_v9  ;;  %v5081_v21 = vld [vmem:[#allocation5 + $0x224] ss:$24 sps:$4 sm:$0xff]   ;;  %v5076_v7 = vld [vmem:[#allocation5 + $0x218] ss:$24 sps:$4 sm:$0xff]  }
  0xcc   :  { %2992 = vmatprep.mubr.bf16.mxu0 %v5675_v28  ;;  %v5687_v28 = vpack.c.bf16 %v154_v62, %v146_v51  ;;  %v162_v51 = vld [vmem:[#allocation2 + $0x3b8] sm:$0xff]  ;;  %v169_v46 = vld [vmem:[#allocation2 + $0x3f0] sm:$0xff] }
  0xcd   :  { %3042 = vmatpush1.bf16.msra.mxu1 %v5064_v10  ;;  %v5084_v10 = vld [vmem:[#allocation5 + $0x24c] ss:$24 sps:$4 sm:$0xff]   ;;  %v170_v62 = vld [vmem:[#allocation2 + $0x3f8] sm:$0xff]  ;;  %v5707_v22 = vpack.c.bf16 %v169_v46, %v161_v33  ;;  %v5118_v46 = vld [vmem:[#allocation5 + $0x368] ss:$24 sps:$4 sm:$0xff]  }
  0xce   :  { %3494 = vmatpush1.bf16.msra.mxu0 %v5067_v47  ;;  %3043 = vmatprep.subr.bf16.mxu1 %v5072_v29  ;;  %6035 = vst [vmem:[#allocation28_spill] sm:$0xff] %v5687_v28  ;;  %v5087_v47 = vld [vmem:[#allocation5 + $0x254] ss:$24 sps:$4 sm:$0xff]   ;;  %v158_v29 = vld [vmem:[#allocation2 + $0x398] sm:$0xff] }
  0xcf   :  { %3495 = vmatprep.subr.bf16.mxu0 %v5075_v35  ;;  %v166_v35 = vld [vmem:[#allocation2 + $0x3d8] sm:$0xff]  ;;  %v5111_v12 = vld [vmem:[#allocation5 + $0x314] ss:$24 sps:$4 sm:$0xff]  }
  0xd0   :  { %2767 = vmatmul.mubr.bf16.gmra.mrb[20].mxu1 %v5681_v57  ;;  %v5120_v33 = vld [vmem:[#allocation5 + $0x36c] ss:$24 sps:$4 sm:$0xff]  }
  0xd1   :  { %2993 = vmatmul.mubr.bf16.gmra.mrb[20].mxu0 %v5683_v9  ;;  %3044 = vmatpush1.bf16.msra.mxu1 %v5070_v48  ;;  %v5090_v48 = vld [vmem:[#allocation5 + $0x27c] ss:$24 sps:$4 sm:$0xff]   ;;  %v5697_v9 = vpack.c.bf16 %v166_v35, %v158_v29  ;;  %v5103_v35 = vld [vmem:[#allocation5 + $0x2e0] ss:$24 sps:$4 sm:$0xff]  }
  0xd2   :  { %3496 = vmatpush1.bf16.msra.mxu0 %v5073_v63  ;;  %3045 = vmatprep.subr.bf16.mxu1 %v5078_v39  ;;  %v5093_v39 = vld [vmem:[#allocation5 + $0x284] ss:$24 sps:$4 sm:$0xff]   ;;  %v5088_v63 = vld [vmem:[#allocation5 + $0x278] ss:$24 sps:$4 sm:$0xff]  }
  0xd3   :  { %3497 = vmatprep.subr.bf16.mxu0 %v5081_v21  ;;  %2776 = vmatprep.mubr.bf16.mxu1 %v5685_v3  ;;  %v5091_v21 = vld [vmem:[#allocation5 + $0x280] ss:$24 sps:$4 sm:$0xff]   ;;  %v5102_v29 = vld [vmem:[#allocation5 + $0x2dc] ss:$24 sps:$4 sm:$0xff]  }
  0xd4   :  { %3002 = vmatprep.mubr.bf16.mxu0 %v5687_v28  ;;  %v5699_v28 = vpack.c.bf16 %v170_v62, %v162_v51  ;;  %v5106_v51 = vld [vmem:[#allocation5 + $0x308] ss:$24 sps:$4 sm:$0xff]  }
  0xd5   :  { %3046 = vmatpush1.bf16.msra.mxu1 %v5076_v7  ;;  %v5099_v7 = vld [vmem:[#allocation5 + $0x2b4] ss:$24 sps:$4 sm:$0xff]   ;;  %v5109_v62 = vld [vmem:[#allocation5 + $0x310] ss:$24 sps:$4 sm:$0xff]  }
  0xd6   :  { %3498 = vmatpush1.bf16.msra.mxu0 %v5079_v18  ;;  %3047 = vmatprep.subr.bf16.mxu1 %v5084_v10  ;;  %v5096_v18 = vld [vmem:[#allocation5 + $0x2ac] ss:$24 sps:$4 sm:$0xff]   ;;  %v5094_v10 = vld [vmem:[#allocation5 + $0x2a8] ss:$24 sps:$4 sm:$0xff]  }
  0xd7   :  { %3499 = vmatprep.subr.bf16.mxu0 %v5087_v47  ;;  %v5097_v47 = vld [vmem:[#allocation5 + $0x2b0] ss:$24 sps:$4 sm:$0xff]  }
  0xd8   :  { %2777 = vmatmul.mubr.bf16.gmra.mrb[24].mxu1 %v5693_v60 }
  0xd9   :  { %3003 = vmatmul.mubr.bf16.gmra.mrb[24].mxu0 %v5695_v54  ;;  %3048 = vmatpush1.bf16.msra.mxu1 %v5082_v19  ;;  %v5105_v19 = vld [vmem:[#allocation5 + $0x2e4] ss:$24 sps:$4 sm:$0xff]  }
  0xda   :  { %3500 = vmatpush1.bf16.msra.mxu0 %v5085_v42  ;;  %3049 = vmatprep.subr.bf16.mxu1 %v5090_v48  ;;  %v5100_v42 = vld [vmem:[#allocation5 + $0x2d8] ss:$24 sps:$4 sm:$0xff]   ;;  %v5114_v48 = vld [vmem:[#allocation5 + $0x33c] ss:$24 sps:$4 sm:$0xff]  }
  0xdb   :  { %3501 = vmatprep.subr.bf16.mxu0 %v5093_v39  ;;  %2786 = vmatprep.mubr.bf16.mxu1 %v5697_v9  ;;  %v5117_v39 = vld [vmem:[#allocation5 + $0x344] ss:$24 sps:$4 sm:$0xff]  }
  0xdc   :  { %3012 = vmatprep.mubr.bf16.mxu0 %v5699_v28 }
  0xdd   :  { %3050 = vmatpush1.bf16.msra.mxu1 %v5088_v63  ;;  %v5112_v63 = vld [vmem:[#allocation5 + $0x338] ss:$24 sps:$4 sm:$0xff]  }
  0xde   :  { %3502 = vmatpush1.bf16.msra.mxu0 %v5091_v21  ;;  %3051 = vmatprep.subr.bf16.mxu1 %v5096_v18  ;;  %v5115_v21 = vld [vmem:[#allocation5 + $0x340] ss:$24 sps:$4 sm:$0xff]   ;;  %v5121_v18 = vld [vmem:[#allocation5 + $0x370] ss:$24 sps:$4 sm:$0xff]  }
  0xdf   :  { %3503 = vmatprep.subr.bf16.mxu0 %v5099_v7  ;;  %v5126_v7 = vld [vmem:[#allocation5 + $0x39c] ss:$24 sps:$4 sm:$0xff]  }
  0xe0   :  { %2787 = vmatmul.mubr.bf16.gmra.mrb[28].mxu1 %v5705_v30 }
  0xe1   :  { %3013 = vmatmul.mubr.bf16.gmra.mrb[28].mxu0 %v5707_v22  ;;  %3052 = vmatpush1.bf16.msra.mxu1 %v5094_v10  ;;  %v5124_v10 = vld [vmem:[#allocation5 + $0x398] ss:$24 sps:$4 sm:$0xff]  }
  0xe2   :  { %3504 = vmatpush1.bf16.msra.mxu0 %v5097_v47  ;;  %3053 = vmatprep.subr.bf16.mxu1 %v5102_v29  ;;  %v5127_v47 = vld [vmem:[#allocation5 + $0x3a0] ss:$24 sps:$4 sm:$0xff]   ;;  %v5132_v29 = vld [vmem:[#allocation5 + $0x3cc] ss:$24 sps:$4 sm:$0xff]  }
  0xe3   :  { %3505 = vmatprep.subr.bf16.mxu0 %v5105_v19  ;;  %3055 = vmatprep.mubr.bf16.mxu1 %v5519_v52  ;;  %v5130_v19 = vld [vmem:[#allocation5 + $0x3c8] ss:$24 sps:$4 sm:$0xff]  }
  0xe4   :  { %3507 = vmatprep.mubr.bf16.mxu0 %v5519_v52  ;;  %v5123_v52 = vld [vmem:[#allocation5 + $0x374] ss:$24 sps:$4 sm:$0xff]  }
  0xe5   :  { %3054 = vmatpush1.bf16.msra.mxu1 %v5100_v42  ;;  %v5133_v42 = vld [vmem:[#allocation5 + $0x3d0] ss:$24 sps:$4 sm:$0xff]  }
  0xe6   :  { %3506 = vmatpush1.bf16.msra.mxu0 %v5103_v35  ;;  %3136 = vmatprep.subr.bf16.mxu1 %v5108_v5  ;;  %v5138_v35 = vld [vmem:[#allocation5 + $0x3fc] ss:$24 sps:$4 sm:$0xff]   ;;  %v5136_v5 = vld [vmem:[#allocation5 + $0x3f8] ss:$24 sps:$4 sm:$0xff]  }
  0xe7   :  { %3588 = vmatprep.subr.bf16.mxu0 %v5111_v12  ;;  %v5139_v12 = vld [vmem:[#allocation5 + $0x400] ss:$24 sps:$4 sm:$0xff]  }
  0xe8   :  { %3056 = vmatmul.mubr.bf16.vlgmr.msra.gmra.mrb[32].mxu1 %v5525_v16 }
  0xe9   :  { %3508 = vmatmul.mubr.bf16.vlgmr.msra.gmra.mrb[32].mxu0 %v5525_v16  ;;  %3137 = vmatpush1.bf16.msra.mxu1 %v5106_v51  ;;  %v5129_v16 = vld [vmem:[#allocation5 + $0x3a4] ss:$24 sps:$4 sm:$0xff]  }
  0xea   :  { %3589 = vmatpush1.bf16.msra.mxu0 %v5109_v62  ;;  %3138 = vmatprep.subr.bf16.mxu1 %v5114_v48  ;;  %v5144_v51 = vld [vmem:[#allocation5 + $0x42c] ss:$24 sps:$4 sm:$0xff]   ;;  %v5142_v62 = vld [vmem:[#allocation5 + $0x428] ss:$24 sps:$4 sm:$0xff]  }
  0xeb   :  { %3590 = vmatprep.subr.bf16.mxu0 %v5117_v39  ;;  %3065 = vmatprep.mubr.bf16.mxu1 %v5529_v23  ;;  %v5145_v48 = vld [vmem:[#allocation5 + $0x430] ss:$24 sps:$4 sm:$0xff]   ;;  %v5150_v39 = vld [vmem:[#allocation5 + $0x45c] ss:$24 sps:$4 sm:$0xff]  }
  0xec   :  { %3517 = vmatprep.mubr.bf16.mxu0 %v5529_v23  ;;  %v5135_v23 = vld [vmem:[#allocation5 + $0x3d4] ss:$24 sps:$4 sm:$0xff]  }
  0xed   :  { %3139 = vmatpush1.bf16.msra.mxu1 %v5112_v63  ;;  %v5148_v63 = vld [vmem:[#allocation5 + $0x458] ss:$24 sps:$4 sm:$0xff]  }
  0xee   :  { %3591 = vmatpush1.bf16.msra.mxu0 %v5115_v21  ;;  %3140 = vmatprep.subr.bf16.mxu1 %v5120_v33  ;;  %v5151_v21 = vld [vmem:[#allocation5 + $0x460] ss:$24 sps:$4 sm:$0xff]   ;;  %v5156_v33 = vld [vmem:[#allocation5 + $0x48c] ss:$24 sps:$4 sm:$0xff]  }
  0xef   :  { %3592 = vmatprep.subr.bf16.mxu0 %v5123_v52  ;;  %v5154_v52 = vld [vmem:[#allocation5 + $0x488] ss:$24 sps:$4 sm:$0xff]  }
  0xf0   :  { %3066 = vmatmul.mubr.bf16.gmra.mrb[36].mxu1 %v5537_v36 }
  0xf1   :  { %3518 = vmatmul.mubr.bf16.gmra.mrb[36].mxu0 %v5537_v36  ;;  %3141 = vmatpush1.bf16.msra.mxu1 %v5118_v46  ;;  %v5141_v36 = vld [vmem:[#allocation5 + $0x404] ss:$24 sps:$4 sm:$0xff]   ;;  %v5157_v46 = vld [vmem:[#allocation5 + $0x490] ss:$24 sps:$4 sm:$0xff]  }
  0xf2   :  { %3593 = vmatpush1.bf16.msra.mxu0 %v5121_v18  ;;  %3142 = vmatprep.subr.bf16.mxu1 %v5126_v7  ;;  %v5162_v18 = vld [vmem:[#allocation5 + $0x4bc] ss:$24 sps:$4 sm:$0xff]   ;;  %v5160_v7 = vld [vmem:[#allocation5 + $0x4b8] ss:$24 sps:$4 sm:$0xff]  }
  0xf3   :  { %3594 = vmatprep.subr.bf16.mxu0 %v5129_v16  ;;  %3075 = vmatprep.mubr.bf16.mxu1 %v5541_v43  ;;  %v5163_v16 = vld [vmem:[#allocation5 + $0x4c0] ss:$24 sps:$4 sm:$0xff]  }
  0xf4   :  { %3527 = vmatprep.mubr.bf16.mxu0 %v5541_v43  ;;  %v5147_v43 = vld [vmem:[#allocation5 + $0x434] ss:$24 sps:$4 sm:$0xff]  }
  0xf5   :  { %3143 = vmatpush1.bf16.msra.mxu1 %v5124_v10  ;;  %v5168_v10 = vld [vmem:[#allocation5 + $0x4ec] ss:$24 sps:$4 sm:$0xff]  }
  0xf6   :  { %3595 = vmatpush1.bf16.msra.mxu0 %v5127_v47  ;;  %3144 = vmatprep.subr.bf16.mxu1 %v5132_v29  ;;  %v5166_v47 = vld [vmem:[#allocation5 + $0x4e8] ss:$24 sps:$4 sm:$0xff]  }
  0xf7   :  { %3596 = vmatprep.subr.bf16.mxu0 %v5135_v23  ;;  %v5169_v29 = vld [vmem:[#allocation5 + $0x4f0] ss:$24 sps:$4 sm:$0xff]   ;;  %v5174_v23 = vld [vmem:[#allocation5 + $0x51c] ss:$24 sps:$4 sm:$0xff]  }
  0xf8   :  { %3076 = vmatmul.mubr.bf16.gmra.mrb[40].mxu1 %v5549_v58 }
  0xf9   :  { %3528 = vmatmul.mubr.bf16.gmra.mrb[40].mxu0 %v5549_v58  ;;  %3145 = vmatpush1.bf16.msra.mxu1 %v5130_v19  ;;  %v5153_v58 = vld [vmem:[#allocation5 + $0x464] ss:$24 sps:$4 sm:$0xff]   ;;  %v5172_v19 = vld [vmem:[#allocation5 + $0x518] ss:$24 sps:$4 sm:$0xff]  }
  0xfa   :  { %3597 = vmatpush1.bf16.msra.mxu0 %v5133_v42  ;;  %3146 = vmatprep.subr.bf16.mxu1 %v5138_v35  ;;  %v5175_v42 = vld [vmem:[#allocation5 + $0x520] ss:$24 sps:$4 sm:$0xff]   ;;  %v5180_v35 = vld [vmem:[#allocation5 + $0x54c] ss:$24 sps:$4 sm:$0xff]  }
  0xfb   :  { %3598 = vmatprep.subr.bf16.mxu0 %v5141_v36  ;;  %3085 = vmatprep.mubr.bf16.mxu1 %v5553_v1  ;;  %v5178_v36 = vld [vmem:[#allocation5 + $0x548] ss:$24 sps:$4 sm:$0xff]  }
  0xfc   :  { %3537 = vmatprep.mubr.bf16.mxu0 %v5553_v1  ;;  %v5159_v1 = vld [vmem:[#allocation5 + $0x494] ss:$24 sps:$4 sm:$0xff]  }
  0xfd   :  { %3147 = vmatpush1.bf16.msra.mxu1 %v5136_v5  ;;  %v5181_v5 = vld [vmem:[#allocation5 + $0x550] ss:$24 sps:$4 sm:$0xff]  }
  0xfe   :  { %3599 = vmatpush1.bf16.msra.mxu0 %v5139_v12  ;;  %3148 = vmatprep.subr.bf16.mxu1 %v5144_v51  ;;  %v5186_v12 = vld [vmem:[#allocation5 + $0x57c] ss:$24 sps:$4 sm:$0xff]   ;;  %v5184_v51 = vld [vmem:[#allocation5 + $0x578] ss:$24 sps:$4 sm:$0xff]  }
  0xff   :  { %3600 = vmatprep.subr.bf16.mxu0 %v5147_v43  ;;  %v5187_v43 = vld [vmem:[#allocation5 + $0x580] ss:$24 sps:$4 sm:$0xff]  }
 0x100   :  { %3086 = vmatmul.mubr.bf16.gmra.mrb[44].mxu1 %v5561_v14 }
 0x101   :  { %3538 = vmatmul.mubr.bf16.gmra.mrb[44].mxu0 %v5561_v14  ;;  %3149 = vmatpush1.bf16.msra.mxu1 %v5142_v62  ;;  %v5165_v14 = vld [vmem:[#allocation5 + $0x4c4] ss:$24 sps:$4 sm:$0xff]  }
 0x102   :  { %3601 = vmatpush1.bf16.msra.mxu0 %v5145_v48  ;;  %3150 = vmatprep.subr.bf16.mxu1 %v5150_v39  ;;  %v5192_v62 = vld [vmem:[#allocation5 + $0x5ac] ss:$24 sps:$4 sm:$0xff]   ;;  %v5190_v48 = vld [vmem:[#allocation5 + $0x5a8] ss:$24 sps:$4 sm:$0xff]  }
 0x103   :  { %3602 = vmatprep.subr.bf16.mxu0 %v5153_v58  ;;  %3095 = vmatprep.mubr.bf16.mxu1 %v5565_v25  ;;  %v5193_v39 = vld [vmem:[#allocation5 + $0x5b0] ss:$24 sps:$4 sm:$0xff]   ;;  %v5198_v58 = vld [vmem:[#allocation5 + $0x5dc] ss:$24 sps:$4 sm:$0xff]  }
 0x104   :  { %3547 = vmatprep.mubr.bf16.mxu0 %v5565_v25  ;;  %v5171_v25 = vld [vmem:[#allocation5 + $0x4f4] ss:$24 sps:$4 sm:$0xff]  }
 0x105   :  { %3151 = vmatpush1.bf16.msra.mxu1 %v5148_v63  ;;  %v5196_v63 = vld [vmem:[#allocation5 + $0x5d8] ss:$24 sps:$4 sm:$0xff]  }
 0x106   :  { %3603 = vmatpush1.bf16.msra.mxu0 %v5151_v21  ;;  %3152 = vmatprep.subr.bf16.mxu1 %v5156_v33  ;;  %v5199_v21 = vld [vmem:[#allocation5 + $0x5e0] ss:$24 sps:$4 sm:$0xff]   ;;  %v5204_v33 = vld [vmem:[#allocation5 + $0x60c] ss:$24 sps:$4 sm:$0xff]  }
 0x107   :  { %3604 = vmatprep.subr.bf16.mxu0 %v5159_v1  ;;  %v5202_v1 = vld [vmem:[#allocation5 + $0x608] ss:$24 sps:$4 sm:$0xff]  }
 0x108   :  { %3096 = vmatmul.mubr.bf16.gmra.mrb[48].mxu1 %v5573_v40 }
 0x109   :  { %3548 = vmatmul.mubr.bf16.gmra.mrb[48].mxu0 %v5573_v40  ;;  %3153 = vmatpush1.bf16.msra.mxu1 %v5154_v52  ;;  %v5177_v40 = vld [vmem:[#allocation5 + $0x524] ss:$24 sps:$4 sm:$0xff]   ;;  %v5205_v52 = vld [vmem:[#allocation5 + $0x610] ss:$24 sps:$4 sm:$0xff]  }
 0x10a   :  { %3605 = vmatpush1.bf16.msra.mxu0 %v5157_v46  ;;  %3154 = vmatprep.subr.bf16.mxu1 %v5162_v18  ;;  %v5210_v46 = vld [vmem:[#allocation5 + $0x63c] ss:$24 sps:$4 sm:$0xff]   ;;  %v5208_v18 = vld [vmem:[#allocation5 + $0x638] ss:$24 sps:$4 sm:$0xff]  }
 0x10b   :  { %3606 = vmatprep.subr.bf16.mxu0 %v5165_v14  ;;  %3105 = vmatprep.mubr.bf16.mxu1 %v5577_v49  ;;  %v5211_v14 = vld [vmem:[#allocation5 + $0x640] ss:$24 sps:$4 sm:$0xff]  }
 0x10c   :  { %3557 = vmatprep.mubr.bf16.mxu0 %v5577_v49  ;;  %v5183_v49 = vld [vmem:[#allocation5 + $0x554] ss:$24 sps:$4 sm:$0xff]  }
 0x10d   :  { %3155 = vmatpush1.bf16.msra.mxu1 %v5160_v7  ;;  %v5216_v7 = vld [vmem:[#allocation5 + $0x66c] ss:$24 sps:$4 sm:$0xff]  }
 0x10e   :  { %3607 = vmatpush1.bf16.msra.mxu0 %v5163_v16  ;;  %3156 = vmatprep.subr.bf16.mxu1 %v5168_v10  ;;  %v5214_v16 = vld [vmem:[#allocation5 + $0x668] ss:$24 sps:$4 sm:$0xff]  }
 0x10f   :  { %3608 = vmatprep.subr.bf16.mxu0 %v5171_v25  ;;  %v5217_v10 = vld [vmem:[#allocation5 + $0x670] ss:$24 sps:$4 sm:$0xff]   ;;  %v5222_v25 = vld [vmem:[#allocation5 + $0x69c] ss:$24 sps:$4 sm:$0xff]  }
 0x110   :  { %3106 = vmatmul.mubr.bf16.gmra.mrb[52].mxu1 %v5585_v4 }
 0x111   :  { %3558 = vmatmul.mubr.bf16.gmra.mrb[52].mxu0 %v5585_v4  ;;  %3157 = vmatpush1.bf16.msra.mxu1 %v5166_v47  ;;  %v5189_v4 = vld [vmem:[#allocation5 + $0x584] ss:$24 sps:$4 sm:$0xff]   ;;  %v5220_v47 = vld [vmem:[#allocation5 + $0x698] ss:$24 sps:$4 sm:$0xff]  }
 0x112   :  { %3609 = vmatpush1.bf16.msra.mxu0 %v5169_v29  ;;  %3158 = vmatprep.subr.bf16.mxu1 %v5174_v23  ;;  %v5223_v29 = vld [vmem:[#allocation5 + $0x6a0] ss:$24 sps:$4 sm:$0xff]   ;;  %v5228_v23 = vld [vmem:[#allocation5 + $0x6cc] ss:$24 sps:$4 sm:$0xff]  }
 0x113   :  { %3610 = vmatprep.subr.bf16.mxu0 %v5177_v40  ;;  %3115 = vmatprep.mubr.bf16.mxu1 %v5589_v11  ;;  %v5226_v40 = vld [vmem:[#allocation5 + $0x6c8] ss:$24 sps:$4 sm:$0xff]  }
 0x114   :  { %3567 = vmatprep.mubr.bf16.mxu0 %v5589_v11  ;;  %v5195_v11 = vld [vmem:[#allocation5 + $0x5b4] ss:$24 sps:$4 sm:$0xff]  }
 0x115   :  { %3159 = vmatpush1.bf16.msra.mxu1 %v5172_v19  ;;  %v5229_v19 = vld [vmem:[#allocation5 + $0x6d0] ss:$24 sps:$4 sm:$0xff]  }
 0x116   :  { %3611 = vmatpush1.bf16.msra.mxu0 %v5175_v42  ;;  %3160 = vmatprep.subr.bf16.mxu1 %v5180_v35  ;;  %v5234_v42 = vld [vmem:[#allocation5 + $0x6fc] ss:$24 sps:$4 sm:$0xff]   ;;  %v5232_v35 = vld [vmem:[#allocation5 + $0x6f8] ss:$24 sps:$4 sm:$0xff]  }
 0x117   :  { %3612 = vmatprep.subr.bf16.mxu0 %v5183_v49  ;;  %v5235_v49 = vld [vmem:[#allocation5 + $0x700] ss:$24 sps:$4 sm:$0xff]  }
 0x118   :  { %3116 = vmatmul.mubr.bf16.gmra.mrb[56].mxu1 %v5597_v32 }
 0x119   :  { %3568 = vmatmul.mubr.bf16.gmra.mrb[56].mxu0 %v5597_v32  ;;  %3161 = vmatpush1.bf16.msra.mxu1 %v5178_v36  ;;  %v5201_v32 = vld [vmem:[#allocation5 + $0x5e4] ss:$24 sps:$4 sm:$0xff]  }
 0x11a   :  { %3613 = vmatpush1.bf16.msra.mxu0 %v5181_v5  ;;  %3162 = vmatprep.subr.bf16.mxu1 %v5186_v12  ;;  %v5240_v36 = vld [vmem:[#allocation5 + $0x72c] ss:$24 sps:$4 sm:$0xff]   ;;  %v5238_v5 = vld [vmem:[#allocation5 + $0x728] ss:$24 sps:$4 sm:$0xff]  }
 0x11b   :  { %3614 = vmatprep.subr.bf16.mxu0 %v5189_v4  ;;  %3125 = vmatprep.mubr.bf16.mxu1 %v5601_v45  ;;  %v5241_v12 = vld [vmem:[#allocation5 + $0x730] ss:$24 sps:$4 sm:$0xff]   ;;  %v5246_v4 = vld [vmem:[#allocation5 + $0x75c] ss:$24 sps:$4 sm:$0xff]  }
 0x11c   :  { %3577 = vmatprep.mubr.bf16.mxu0 %v5601_v45  ;;  %v5207_v45 = vld [vmem:[#allocation5 + $0x614] ss:$24 sps:$4 sm:$0xff]  }
 0x11d   :  { %3163 = vmatpush1.bf16.msra.mxu1 %v5184_v51  ;;  %v5244_v51 = vld [vmem:[#allocation5 + $0x758] ss:$24 sps:$4 sm:$0xff]  }
 0x11e   :  { %3615 = vmatpush1.bf16.msra.mxu0 %v5187_v43  ;;  %3164 = vmatprep.subr.bf16.mxu1 %v5192_v62  ;;  %v5247_v43 = vld [vmem:[#allocation5 + $0x760] ss:$24 sps:$4 sm:$0xff]   ;;  %v5252_v62 = vld [vmem:[#allocation5 + $0x78c] ss:$24 sps:$4 sm:$0xff]  }
 0x11f   :  { %3616 = vmatprep.subr.bf16.mxu0 %v5195_v11  ;;  %v5250_v11 = vld [vmem:[#allocation5 + $0x788] ss:$24 sps:$4 sm:$0xff]  }
 0x120   :  { %3126 = vmatmul.mubr.bf16.gmra.mrb[60].mxu1 %v5609_v0 }
 0x121   :  { %3578 = vmatmul.mubr.bf16.gmra.mrb[60].mxu0 %v5609_v0  ;;  %3165 = vmatpush1.bf16.msra.mxu1 %v5190_v48  ;;  %v5213_v0 = vld [vmem:[#allocation5 + $0x644] ss:$24 sps:$4 sm:$0xff]   ;;  %v5253_v48 = vld [vmem:[#allocation5 + $0x790] ss:$24 sps:$4 sm:$0xff]  }
 0x122   :  { %3617 = vmatpush1.bf16.msra.mxu0 %v5193_v39  ;;  %3166 = vmatprep.subr.bf16.mxu1 %v5198_v58  ;;  %v5258_v39 = vld [vmem:[#allocation5 + $0x7bc] ss:$24 sps:$4 sm:$0xff]   ;;  %v5256_v58 = vld [vmem:[#allocation5 + $0x7b8] ss:$24 sps:$4 sm:$0xff]  }
 0x123   :  { %3618 = vmatprep.subr.bf16.mxu0 %v5201_v32  ;;  %3168 = vmatprep.mubr.bf16.mxu1 %v5613_v13  ;;  %v5259_v32 = vld [vmem:[#allocation5 + $0x7c0] ss:$24 sps:$4 sm:$0xff]  }
 0x124   :  { %3620 = vmatprep.mubr.bf16.mxu0 %v5613_v13  ;;  %v5219_v13 = vld [vmem:[#allocation5 + $0x674] ss:$24 sps:$4 sm:$0xff]  }
 0x125   :  { %3167 = vmatpush1.bf16.msra.mxu1 %v5196_v63  ;;  %v5264_v63 = vld [vmem:[#allocation5 + $0x7ec] ss:$24 sps:$4 sm:$0xff]  }
 0x126   :  { %3619 = vmatpush1.bf16.msra.mxu0 %v5199_v21  ;;  %3249 = vmatprep.subr.bf16.mxu1 %v5204_v33  ;;  %v5262_v21 = vld [vmem:[#allocation5 + $0x7e8] ss:$24 sps:$4 sm:$0xff]  }
 0x127   :  { %3701 = vmatprep.subr.bf16.mxu0 %v5207_v45  ;;  %v5265_v33 = vld [vmem:[#allocation5 + $0x7f0] ss:$24 sps:$4 sm:$0xff]   ;;  %v5270_v45 = vld [vmem:[#allocation5 + $0x81c] ss:$24 sps:$4 sm:$0xff]  }
 0x128   :  { %3169 = vmatmul.mubr.bf16.vlgmr.msra.gmra.mrb[32].mxu1 %v5621_v38 }
 0x129   :  { %3621 = vmatmul.mubr.bf16.vlgmr.msra.gmra.mrb[32].mxu0 %v5621_v38  ;;  %3250 = vmatpush1.bf16.msra.mxu1 %v5202_v1  ;;  %v5225_v38 = vld [vmem:[#allocation5 + $0x6a4] ss:$24 sps:$4 sm:$0xff]   ;;  %v5268_v1 = vld [vmem:[#allocation5 + $0x818] ss:$24 sps:$4 sm:$0xff]  }
 0x12a   :  { %3702 = vmatpush1.bf16.msra.mxu0 %v5205_v52  ;;  %3251 = vmatprep.subr.bf16.mxu1 %v5210_v46  ;;  %v5271_v52 = vld [vmem:[#allocation5 + $0x820] ss:$24 sps:$4 sm:$0xff]   ;;  %v5276_v46 = vld [vmem:[#allocation5 + $0x84c] ss:$24 sps:$4 sm:$0xff]  }
 0x12b   :  { %3703 = vmatprep.subr.bf16.mxu0 %v5213_v0  ;;  %3178 = vmatprep.mubr.bf16.mxu1 %v5625_v55  ;;  %v5274_v0 = vld [vmem:[#allocation5 + $0x848] ss:$24 sps:$4 sm:$0xff]  }
 0x12c   :  { %3630 = vmatprep.mubr.bf16.mxu0 %v5625_v55  ;;  %v5231_v55 = vld [vmem:[#allocation5 + $0x6d4] ss:$24 sps:$4 sm:$0xff]  }
 0x12d   :  { %3252 = vmatpush1.bf16.msra.mxu1 %v5208_v18  ;;  %v5277_v18 = vld [vmem:[#allocation5 + $0x850] ss:$24 sps:$4 sm:$0xff]  }
 0x12e   :  { %3704 = vmatpush1.bf16.msra.mxu0 %v5211_v14  ;;  %3253 = vmatprep.subr.bf16.mxu1 %v5216_v7  ;;  %v5282_v14 = vld [vmem:[#allocation5 + $0x87c] ss:$24 sps:$4 sm:$0xff]   ;;  %v5280_v7 = vld [vmem:[#allocation5 + $0x878] ss:$24 sps:$4 sm:$0xff]  }
 0x12f   :  { %3705 = vmatprep.subr.bf16.mxu0 %v5219_v13  ;;  %v5283_v13 = vld [vmem:[#allocation5 + $0x880] ss:$24 sps:$4 sm:$0xff]  }
 0x130   :  { %3179 = vmatmul.mubr.bf16.gmra.mrb[36].mxu1 %v5633_v20 }
 0x131   :  { %3631 = vmatmul.mubr.bf16.gmra.mrb[36].mxu0 %v5633_v20  ;;  %3254 = vmatpush1.bf16.msra.mxu1 %v5214_v16  ;;  %v5237_v20 = vld [vmem:[#allocation5 + $0x704] ss:$24 sps:$4 sm:$0xff]  }
 0x132   :  { %3706 = vmatpush1.bf16.msra.mxu0 %v5217_v10  ;;  %3255 = vmatprep.subr.bf16.mxu1 %v5222_v25  ;;  %v5288_v16 = vld [vmem:[#allocation5 + $0x8ac] ss:$24 sps:$4 sm:$0xff]   ;;  %v5286_v10 = vld [vmem:[#allocation5 + $0x8a8] ss:$24 sps:$4 sm:$0xff]  }
 0x133   :  { %3707 = vmatprep.subr.bf16.mxu0 %v5225_v38  ;;  %3188 = vmatprep.mubr.bf16.mxu1 %v5637_v31  ;;  %v5289_v25 = vld [vmem:[#allocation5 + $0x8b0] ss:$24 sps:$4 sm:$0xff]   ;;  %v5294_v38 = vld [vmem:[#allocation5 + $0x8dc] ss:$24 sps:$4 sm:$0xff]  }
 0x134   :  { %3640 = vmatprep.mubr.bf16.mxu0 %v5637_v31  ;;  %v5243_v31 = vld [vmem:[#allocation5 + $0x734] ss:$24 sps:$4 sm:$0xff]  }
 0x135   :  { %3256 = vmatpush1.bf16.msra.mxu1 %v5220_v47  ;;  %v5292_v47 = vld [vmem:[#allocation5 + $0x8d8] ss:$24 sps:$4 sm:$0xff]  }
 0x136   :  { %3708 = vmatpush1.bf16.msra.mxu0 %v5223_v29  ;;  %3257 = vmatprep.subr.bf16.mxu1 %v5228_v23  ;;  %v5295_v29 = vld [vmem:[#allocation5 + $0x8e0] ss:$24 sps:$4 sm:$0xff]   ;;  %v5300_v23 = vld [vmem:[#allocation5 + $0x90c] ss:$24 sps:$4 sm:$0xff]  }
 0x137   :  { %3709 = vmatprep.subr.bf16.mxu0 %v5231_v55  ;;  %v5298_v55 = vld [vmem:[#allocation5 + $0x908] ss:$24 sps:$4 sm:$0xff]  }
 0x138   :  { %3189 = vmatmul.mubr.bf16.gmra.mrb[40].mxu1 %v5645_v6 }
 0x139   :  { %3641 = vmatmul.mubr.bf16.gmra.mrb[40].mxu0 %v5645_v6  ;;  %3258 = vmatpush1.bf16.msra.mxu1 %v5226_v40  ;;  %v5249_v6 = vld [vmem:[#allocation5 + $0x764] ss:$24 sps:$4 sm:$0xff]   ;;  %v5301_v40 = vld [vmem:[#allocation5 + $0x910] ss:$24 sps:$4 sm:$0xff]  }
 0x13a   :  { %3710 = vmatpush1.bf16.msra.mxu0 %v5229_v19  ;;  %3259 = vmatprep.subr.bf16.mxu1 %v5234_v42  ;;  %v5306_v19 = vld [vmem:[#allocation5 + $0x93c] ss:$24 sps:$4 sm:$0xff]   ;;  %v5304_v42 = vld [vmem:[#allocation5 + $0x938] ss:$24 sps:$4 sm:$0xff]  }
 0x13b   :  { %3711 = vmatprep.subr.bf16.mxu0 %v5237_v20  ;;  %3198 = vmatprep.mubr.bf16.mxu1 %v5649_v27  ;;  %v5307_v20 = vld [vmem:[#allocation5 + $0x940] ss:$24 sps:$4 sm:$0xff]  }
 0x13c   :  { %3650 = vmatprep.mubr.bf16.mxu0 %v5649_v27  ;;  %v5255_v27 = vld [vmem:[#allocation5 + $0x794] ss:$24 sps:$4 sm:$0xff]  }
 0x13d   :  { %3260 = vmatpush1.bf16.msra.mxu1 %v5232_v35  ;;  %v5312_v35 = vld [vmem:[#allocation5 + $0x96c] ss:$24 sps:$4 sm:$0xff]  }
 0x13e   :  { %3712 = vmatpush1.bf16.msra.mxu0 %v5235_v49  ;;  %3261 = vmatprep.subr.bf16.mxu1 %v5240_v36  ;;  %v621_v49 = vlaneseq  ;;  %v5310_v36 = vld [vmem:[#allocation5 + $0x968] ss:$24 sps:$4 sm:$0xff]  }
 0x13f   :  { %3713 = vmatprep.subr.bf16.mxu0 %v5243_v31  ;;  %v5313_v31 = vld [vmem:[#allocation5 + $0x970] ss:$24 sps:$4 sm:$0xff]  }
 0x140   :  { %3199 = vmatmul.mubr.bf16.gmra.mrb[44].mxu1 %v5657_v8 }
 0x141   :  { %3651 = vmatmul.mubr.bf16.gmra.mrb[44].mxu0 %v5657_v8  ;;  %3262 = vmatpush1.bf16.msra.mxu1 %v5238_v5  ;;  %v5261_v8 = vld [vmem:[#allocation5 + $0x7c4] ss:$24 sps:$4 sm:$0xff]  }
 0x142   :  { %3714 = vmatpush1.bf16.msra.mxu0 %v5241_v12  ;;  %3263 = vmatprep.subr.bf16.mxu1 %v5246_v4  ;;  %v5321_v5 = vld [vmem:[#allocation5 + $0x9a4] ss:$24 sps:$4 sm:$0xff]   ;;  %v5783_v12 = vshrl.u32 %v621_v49, 7  ;;  %v5316_v4 = vld [vmem:[#allocation5 + $0x998] ss:$24 sps:$4 sm:$0xff]  }
 0x143   :  { %3715 = vmatprep.subr.bf16.mxu0 %v5249_v6  ;;  %3208 = vmatprep.mubr.bf16.mxu1 %v5661_v34  ;;  %v5319_v6 = vld [vmem:[#allocation5 + $0x9a0] ss:$24 sps:$4 sm:$0xff]  }
 0x144   :  { %3660 = vmatprep.mubr.bf16.mxu0 %v5661_v34  ;;  %v5267_v34 = vld [vmem:[#allocation5 + $0x7f4] ss:$24 sps:$4 sm:$0xff]  }
 0x145   :  { %3264 = vmatpush1.bf16.msra.mxu1 %v5244_v51  ;;  %v5327_v51 = vld [vmem:[#allocation5 + $0x9d4] ss:$24 sps:$4 sm:$0xff]  }
 0x146   :  { %3716 = vmatpush1.bf16.msra.mxu0 %v5247_v43  ;;  %3265 = vmatprep.subr.bf16.mxu1 %v5252_v62  ;;  %v623_v43 = vsub.s32 0, %v5783_v12  ;;  %v627_v62 = vsub.s32 1, %v5783_v12 }
 0x147   :  { %3717 = vmatprep.subr.bf16.mxu0 %v5255_v27  ;;  %v5325_v27 = vld [vmem:[#allocation5 + $0x9d0] ss:$24 sps:$4 sm:$0xff]  }
 0x148   :  { %3209 = vmatmul.mubr.bf16.gmra.mrb[48].mxu1 %v5669_v61 }
 0x149   :  { %3661 = vmatmul.mubr.bf16.gmra.mrb[48].mxu0 %v5669_v61  ;;  %3266 = vmatpush1.bf16.msra.mxu1 %v5250_v11  ;;  %v5273_v61 = vld [vmem:[#allocation5 + $0x824] ss:$24 sps:$4 sm:$0xff]  }
 0x14a   :  { %3718 = vmatpush1.bf16.msra.mxu0 %v5253_v48  ;;  %3267 = vmatprep.subr.bf16.mxu1 %v5258_v39  ;;  %v5792_v11 = vld [vmem:[%s5980_s2] sm:$0x3f]  ;;  %v5330_v48 = vld [vmem:[#allocation5 + $0x9fc] ss:$24 sps:$4 sm:$0xff]   ;;  %s5472_s2 = smov [#allocation7]  }
 0x14b   :  { %3719 = vmatprep.subr.bf16.mxu0 %v5261_v8  ;;  %3218 = vmatprep.mubr.bf16.mxu1 %v5673_v56  ;;  %v5333_v39 = vld [vmem:[#allocation5 + $0xa04] ss:$24 sps:$4 sm:$0xff]   ;;  %v5800_v8 = vrot.slane %v5792_v11, %v627_v62  ;;  %s4028_s13 = sshll.u32 %s5472_s2, 4  ;;  %s4029_s13 = int_to_ptr.vmem [resolvable:$true] %s4028_s13 }
 0x14c   :  { %3670 = vmatprep.mubr.bf16.mxu0 %v5673_v56  ;;  %v5279_v56 = vld [vmem:[#allocation5 + $0x854] ss:$24 sps:$4 sm:$0xff]   ;;  %s5438_s14 = scalar_lea.vmem %s4029_s13, 12288  ;;  %p5443_p3 = scmp.lt.s32.totalorder %s4029_s13, %s4029_s13 }
 0x14d   :  { %3268 = vmatpush1.bf16.msra.mxu1 %v5256_v58  ;;  %v5328_v58 = vld [vmem:[#allocation5 + $0x9f8] ss:$24 sps:$4 sm:$0xff]   ;;  %v5360_v62 = vld [vmem:[#allocation5 + $0xaec] ss:$24 sps:$4 sm:$0xff]   ;;  %p5439_p2 = scmp.ne.s32.totalorder %s4029_s13, %s5438_s14  ;;  %p5444_p4 = scmp.lt.s32.totalorder %s5438_s14, %s5438_s14 }
 0x14e   :  { %3720 = vmatpush1.bf16.msra.mxu0 %v5259_v32  ;;  %3269 = vmatprep.subr.bf16.mxu1 %v5264_v63  ;;  %v5331_v32 = vld [vmem:[#allocation5 + $0xa00] ss:$24 sps:$4 sm:$0xff]   ;;  %v5336_v63 = vld [vmem:[#allocation5 + $0xa2c] ss:$24 sps:$4 sm:$0xff]  }
 0x14f   :  { %3721 = vmatprep.subr.bf16.mxu0 %v5267_v34  ;;  %v5339_v34 = vld [vmem:[#allocation5 + $0xa34] ss:$24 sps:$4 sm:$0xff]   ;;  %p5445_p5 = por %p5444_p4, %p5443_p3 }
 0x150   :  { %3219 = vmatmul.mubr.bf16.gmra.mrb[52].mxu1 %v5681_v57 }
 0x151   :  { %3671 = vmatmul.mubr.bf16.gmra.mrb[52].mxu0 %v5681_v57  ;;  %3270 = vmatpush1.bf16.msra.mxu1 %v5262_v21  ;;  %v5285_v57 = vld [vmem:[#allocation5 + $0x884] ss:$24 sps:$4 sm:$0xff]   ;;  %p5446_p6 = pnand %p5445_p5, %p5439_p2 }
 0x152   :  { %3722 = vmatpush1.bf16.msra.mxu0 %v5265_v33  ;;  %3271 = vmatprep.subr.bf16.mxu1 %v5270_v45 }
 0x153   :  { %3723 = vmatprep.subr.bf16.mxu0 %v5273_v61  ;;  %3228 = vmatprep.mubr.bf16.mxu1 %v5685_v3 }
 0x154   :  { %3680 = vmatprep.mubr.bf16.mxu0 %v5685_v3  ;;  %v5291_v3 = vld [vmem:[#allocation5 + $0x8b4] ss:$24 sps:$4 sm:$0xff]  }
 0x155   :  { %3272 = vmatpush1.bf16.msra.mxu1 %v5268_v1 }
 0x156   :  { %3724 = vmatpush1.bf16.msra.mxu0 %v5271_v52  ;;  %3273 = vmatprep.subr.bf16.mxu1 %v5276_v46 }
 0x157   :  { %3725 = vmatprep.subr.bf16.mxu0 %v5279_v56  ;;  %v5334_v56 = vld [vmem:[#allocation5 + $0xa28] ss:$24 sps:$4 sm:$0xff]  }
 0x158   :  { %3229 = vmatmul.mubr.bf16.gmra.mrb[56].mxu1 %v5693_v60 }
 0x159   :  { %3681 = vmatmul.mubr.bf16.gmra.mrb[56].mxu0 %v5693_v60  ;;  %3274 = vmatpush1.bf16.msra.mxu1 %v5274_v0  ;;  %v5297_v60 = vld [vmem:[#allocation5 + $0x8e4] ss:$24 sps:$4 sm:$0xff]   ;;  %v5337_v0 = vld [vmem:[#allocation5 + $0xa30] ss:$24 sps:$4 sm:$0xff]  }
 0x15a   :  { %3726 = vmatpush1.bf16.msra.mxu0 %v5277_v18  ;;  %3275 = vmatprep.subr.bf16.mxu1 %v5282_v14 }
 0x15b   :  { %3727 = vmatprep.subr.bf16.mxu0 %v5285_v57  ;;  %3238 = vmatprep.mubr.bf16.mxu1 %v5697_v9 }
 0x15c   :  { %3690 = vmatprep.mubr.bf16.mxu0 %v5697_v9  ;;  %v5303_v9 = vld [vmem:[#allocation5 + $0x914] ss:$24 sps:$4 sm:$0xff]  }
 0x15d   :  { %3276 = vmatpush1.bf16.msra.mxu1 %v5280_v7 }
 0x15e   :  { %3728 = vmatpush1.bf16.msra.mxu0 %v5283_v13  ;;  %3277 = vmatprep.subr.bf16.mxu1 %v5288_v16  ;;  %v5345_v13 = vld [vmem:[#allocation5 + $0xa64] ss:$24 sps:$4 sm:$0xff]  }
 0x15f   :  { %3729 = vmatprep.subr.bf16.mxu0 %v5291_v3 }
 0x160   :  { %3239 = vmatmul.mubr.bf16.gmra.mrb[60].mxu1 %v5705_v30 }
 0x161   :  { %3691 = vmatmul.mubr.bf16.gmra.mrb[60].mxu0 %v5705_v30  ;;  %3278 = vmatpush1.bf16.msra.mxu1 %v5286_v10  ;;  %v5309_v30 = vld [vmem:[#allocation5 + $0x944] ss:$24 sps:$4 sm:$0xff]  }
 0x162   :  { %3730 = vmatpush1.bf16.msra.mxu0 %v5289_v25  ;;  %3279 = vmatprep.subr.bf16.mxu1 %v5294_v38  ;;  %v5340_v38 = vld [vmem:[#allocation5 + $0xa58] ss:$24 sps:$4 sm:$0xff]  }
 0x163   :  { %3731 = vmatprep.subr.bf16.mxu0 %v5297_v60  ;;  %3281 = vmatprep.mubr.bf16.mxu1 %v5521_v53  ;;  %v5343_v60 = vld [vmem:[#allocation5 + $0xa60] ss:$24 sps:$4 sm:$0xff]  }
 0x164   :  { %3733 = vmatprep.mubr.bf16.mxu0 %v5521_v53  ;;  %v5315_v53 = vld [vmem:[#allocation5 + $0x974] ss:$24 sps:$4 sm:$0xff]  }
 0x165   :  { %3280 = vmatpush1.bf16.msra.mxu1 %v5292_v47  ;;  %v5348_v47 = vld [vmem:[#allocation5 + $0xa8c] ss:$24 sps:$4 sm:$0xff]  }
 0x166   :  { %3732 = vmatpush1.bf16.msra.mxu0 %v5295_v29  ;;  %3362 = vmatprep.subr.bf16.mxu1 %v5300_v23  ;;  %v5351_v29 = vld [vmem:[#allocation5 + $0xa94] ss:$24 sps:$4 sm:$0xff]  }
 0x167   :  { %3814 = vmatprep.subr.bf16.mxu0 %v5303_v9 }
 0x168   :  { %3282 = vmatmul.mubr.bf16.vlgmr.msra.gmra.mrb[32].mxu1 %v5527_v17 }
 0x169   :  { %3734 = vmatmul.mubr.bf16.vlgmr.msra.gmra.mrb[32].mxu0 %v5527_v17  ;;  %3363 = vmatpush1.bf16.msra.mxu1 %v5298_v55  ;;  %v5318_v17 = vld [vmem:[#allocation5 + $0x99c] ss:$24 sps:$4 sm:$0xff]  }
 0x16a   :  { %3815 = vmatpush1.bf16.msra.mxu0 %v5301_v40  ;;  %3364 = vmatprep.subr.bf16.mxu1 %v5306_v19 }
 0x16b   :  { %3816 = vmatprep.subr.bf16.mxu0 %v5309_v30  ;;  %3291 = vmatprep.mubr.bf16.mxu1 %v5531_v24 }
 0x16c   :  { %3743 = vmatprep.mubr.bf16.mxu0 %v5531_v24  ;;  %v5324_v24 = vld [vmem:[#allocation5 + $0x9cc] ss:$24 sps:$4 sm:$0xff]  }
 0x16d   :  { %3365 = vmatpush1.bf16.msra.mxu1 %v5304_v42 }
 0x16e   :  { %3817 = vmatpush1.bf16.msra.mxu0 %v5307_v20  ;;  %3366 = vmatprep.subr.bf16.mxu1 %v5312_v35  ;;  %v5346_v20 = vld [vmem:[#allocation5 + $0xa88] ss:$24 sps:$4 sm:$0xff]  }
 0x16f   :  { %3818 = vmatprep.subr.bf16.mxu0 %v5315_v53  ;;  %v5349_v35 = vld [vmem:[#allocation5 + $0xa90] ss:$24 sps:$4 sm:$0xff]  }
 0x170   :  { %3292 = vmatmul.mubr.bf16.gmra.mrb[36].mxu1 %v5539_v37 }
 0x171   :  { %3744 = vmatmul.mubr.bf16.gmra.mrb[36].mxu0 %v5539_v37  ;;  %3367 = vmatpush1.bf16.msra.mxu1 %v5310_v36  ;;  %v5322_v37 = vld [vmem:[#allocation5 + $0x9c8] ss:$24 sps:$4 sm:$0xff]  }
 0x172   :  { %3819 = vmatpush1.bf16.msra.mxu0 %v5313_v31  ;;  %3368 = vmatprep.subr.bf16.mxu1 %v5318_v17  ;;  %v5357_v17 = vld [vmem:[#allocation5 + $0xac4] ss:$24 sps:$4 sm:$0xff]  }
 0x173   :  { %3820 = vmatprep.subr.bf16.mxu0 %v5321_v5  ;;  %3301 = vmatprep.mubr.bf16.mxu1 %v5543_v44 }
 0x174   :  { %3753 = vmatprep.mubr.bf16.mxu0 %v5543_v44  ;;  %v5797_v44 = vrot.slane %v5792_v11, %v623_v43  ;;  %v5355_v43 = vld [vmem:[#allocation5 + $0xac0] ss:$24 sps:$4 sm:$0xff]  }
 0x175   :  { %3369 = vmatpush1.bf16.msra.mxu1 %v5316_v4 }
 0x176   :  { %3821 = vmatpush1.bf16.msra.mxu0 %v5319_v6  ;;  %3370 = vmatprep.subr.bf16.mxu1 %v5324_v24 }
 0x177   :  { %3822 = vmatprep.subr.bf16.mxu0 %v5327_v51  ;;  %v5352_v51 = vld [vmem:[#allocation5 + $0xab8] ss:$24 sps:$4 sm:$0xff]  }
 0x178   :  { %3302 = vmatmul.mubr.bf16.gmra.mrb[40].mxu1 %v5551_v59 }
 0x179   :  { %3754 = vmatmul.mubr.bf16.gmra.mrb[40].mxu0 %v5551_v59  ;;  %3371 = vmatpush1.bf16.msra.mxu1 %v5322_v37  ;;  %v5363_v37 = vld [vmem:[#allocation5 + $0xaf4] ss:$24 sps:$4 sm:$0xff]  }
 0x17a   :  { %3823 = vmatpush1.bf16.msra.mxu0 %v5325_v27  ;;  %3372 = vmatprep.subr.bf16.mxu1 %v5330_v48 }
 0x17b   :  { %3824 = vmatprep.subr.bf16.mxu0 %v5333_v39  ;;  %v2718_v21 = vpop.f32.mrb[0].mxu1  ;;  %3311 = vmatprep.mubr.bf16.mxu1 %v5555_v2 }
 0x17c   :  { %v2944_v33 = vpop.f32.mrb[0].mxu0  ;;  %3763 = vmatprep.mubr.bf16.mxu0 %v5555_v2  ;;  %v4425_v59 = vadd.f32 %v2718_v21, %v5797_v44  ;;  %v2720_v45 = vpop.f32.mrb[1].mxu1  ;;  %v5342_v2 = vld [vmem:[#allocation5 + $0xa5c] ss:$24 sps:$4 sm:$0xff]   ;;  %v5358_v21 = vld [vmem:[#allocation5 + $0xae8] ss:$24 sps:$4 sm:$0xff]  }
 0x17d   :  { %v2946_v61 = vpop.f32.mrb[1].mxu0  ;;  %v4427_v1 = vadd.f32 %v2720_v45, %v5800_v8  ;;  %v2722_v52 = vpop.f32.mrb[2].mxu1  ;;  %3373 = vmatpush1.bf16.msra.mxu1 %v5328_v58 }
 0x17e   :  { %v2948_v46 = vpop.f32.mrb[2].mxu0  ;;  %3825 = vmatpush1.bf16.msra.mxu0 %v5331_v32  ;;  %v4426_v18 = vadd.f32 %v4425_v59, %v2944_v33  ;;  %v4429_v14 = vadd.f32 %v2722_v52, %v5797_v44  ;;  %v2724_v57 = vpop.f32.mrb[3].mxu1  ;;  %3374 = vmatprep.subr.bf16.mxu1 %v5336_v63  ;;  %v5361_v33 = vld [vmem:[#allocation5 + $0xaf0] ss:$24 sps:$4 sm:$0xff]   ;;  %v5369_v52 = vld [vmem:[#allocation5 + $0xb24] ss:$24 sps:$4 sm:$0xff]  }
 0x17f   :  { %v2950_v7 = vpop.f32.mrb[3].mxu0  ;;  %3826 = vmatprep.subr.bf16.mxu0 %v5339_v34  ;;  %v4428_v16 = vadd.f32 %v4427_v1, %v2946_v61  ;;  %v4431_v3 = vadd.f32 %v2724_v57, %v5800_v8  ;;  %v5364_v57 = vld [vmem:[#allocation5 + $0xb18] ss:$24 sps:$4 sm:$0xff]  }
 0x180   :  { %3927 = vst [vmem:[#allocation7] sm:$0xff] %v4426_v18  ;;  %v4430_v10 = vadd.f32 %v4429_v14, %v2948_v46  ;;  %3312 = vmatmul.mubr.bf16.gmra.mrb[44].mxu1 %v5563_v15  ;;  %v6036_v18 = vld [vmem:[#allocation11_spill] sm:$0xff] }
 0x181   :  { %3764 = vmatmul.mubr.bf16.gmra.mrb[44].mxu0 %v5563_v15  ;;  %3928 = vst [vmem:[#allocation7 + $0x8] sm:$0xff] %v4428_v16  ;;  %v4432_v25 = vadd.f32 %v4431_v3, %v2950_v7  ;;  %3375 = vmatpush1.bf16.msra.mxu1 %v5334_v56  ;;  %v5367_v7 = vld [vmem:[#allocation5 + $0xb20] ss:$24 sps:$4 sm:$0xff]  }
 0x182   :  { %3827 = vmatpush1.bf16.msra.mxu0 %v5337_v0  ;;  %3933 = vst [vmem:[#allocation7 + $0x30] sm:$0xff] %v4430_v10  ;;  %3376 = vmatprep.subr.bf16.mxu1 %v5342_v2  ;;  %v5372_v2 = vld [vmem:[#allocation5 + $0xb4c] ss:$24 sps:$4 sm:$0xff]  }
 0x183   :  { %3828 = vmatprep.subr.bf16.mxu0 %v5345_v13  ;;  %3934 = vst [vmem:[#allocation7 + $0x38] sm:$0xff] %v4432_v25  ;;  %v2728_v23 = vpop.f32.mrb[4].mxu1  ;;  %3321 = vmatprep.mubr.bf16.mxu1 %v5567_v26  ;;  %v5375_v13 = vld [vmem:[#allocation5 + $0xb54] ss:$24 sps:$4 sm:$0xff]  }
 0x184   :  { %v2954_v9 = vpop.f32.mrb[4].mxu0  ;;  %3773 = vmatprep.mubr.bf16.mxu0 %v5567_v26  ;;  %v4433_v15 = vadd.f32 %v2728_v23, %v5797_v44  ;;  %v2730_v55 = vpop.f32.mrb[5].mxu1  ;;  %v5354_v26 = vld [vmem:[#allocation5 + $0xabc] ss:$24 sps:$4 sm:$0xff]   ;;  %v6037_v10 = vld [vmem:[#allocation12_spill] sm:$0xff] }
 0x185   :  { %v2956_v40 = vpop.f32.mrb[5].mxu0  ;;  %v4435_v19 = vadd.f32 %v2730_v55, %v5800_v8  ;;  %v2732_v30 = vpop.f32.mrb[6].mxu1  ;;  %3377 = vmatpush1.bf16.msra.mxu1 %v5340_v38 }
 0x186   :  { %v2958_v42 = vpop.f32.mrb[6].mxu0  ;;  %3829 = vmatpush1.bf16.msra.mxu0 %v5343_v60  ;;  %v4434_v53 = vadd.f32 %v4433_v15, %v2954_v9  ;;  %v4437_v49 = vadd.f32 %v2732_v30, %v5797_v44  ;;  %v2734_v36 = vpop.f32.mrb[7].mxu1  ;;  %3378 = vmatprep.subr.bf16.mxu1 %v5348_v47  ;;  %v5370_v9 = vld [vmem:[#allocation5 + $0xb48] ss:$24 sps:$4 sm:$0xff]  }
 0x187   :  { %v2960_v31 = vpop.f32.mrb[7].mxu0  ;;  %3830 = vmatprep.subr.bf16.mxu0 %v5351_v29  ;;  %v4436_v5 = vadd.f32 %v4435_v19, %v2956_v40  ;;  %v4439_v4 = vadd.f32 %v2734_v36, %v5800_v8  ;;  %v5373_v15 = vld [vmem:[#allocation5 + $0xb50] ss:$24 sps:$4 sm:$0xff]  }
 0x188   :  { %3939 = vst [vmem:[#allocation7 + $0x60] sm:$0xff] %v4434_v53  ;;  %v4438_v6 = vadd.f32 %v4437_v49, %v2958_v42  ;;  %3322 = vmatmul.mubr.bf16.gmra.mrb[48].mxu1 %v5575_v41  ;;  %v5378_v42 = vld [vmem:[#allocation5 + $0xb7c] ss:$24 sps:$4 sm:$0xff]  }
 0x189   :  { %3774 = vmatmul.mubr.bf16.gmra.mrb[48].mxu0 %v5575_v41  ;;  %3940 = vst [vmem:[#allocation7 + $0x68] sm:$0xff] %v4436_v5  ;;  %v4440_v24 = vadd.f32 %v4439_v4, %v2960_v31  ;;  %3379 = vmatpush1.bf16.msra.mxu1 %v5346_v20  ;;  %v5381_v20 = vld [vmem:[#allocation5 + $0xb84] ss:$24 sps:$4 sm:$0xff]   ;;  %v6038_v36 = vld [vmem:[#allocation13_spill] sm:$0xff] }
 0x18a   :  { %3831 = vmatpush1.bf16.msra.mxu0 %v5349_v35  ;;  %3945 = vst [vmem:[#allocation7 + $0x90] sm:$0xff] %v4438_v6  ;;  %3380 = vmatprep.subr.bf16.mxu1 %v5354_v26  ;;  %v5376_v26 = vld [vmem:[#allocation5 + $0xb78] ss:$24 sps:$4 sm:$0xff]   ;;  %v5384_v5 = vld [vmem:[#allocation5 + $0xbac] ss:$24 sps:$4 sm:$0xff]  }
 0x18b   :  { %3832 = vmatprep.subr.bf16.mxu0 %v5357_v17  ;;  %3946 = vst [vmem:[#allocation7 + $0x98] sm:$0xff] %v4440_v24  ;;  %v2738_v27 = vpop.f32.mrb[8].mxu1  ;;  %3331 = vmatprep.mubr.bf16.mxu1 %v5579_v50  ;;  %v5379_v17 = vld [vmem:[#allocation5 + $0xb80] ss:$24 sps:$4 sm:$0xff]   ;;  %v5387_v4 = vld [vmem:[#allocation5 + $0xbb4] ss:$24 sps:$4 sm:$0xff]  }
 0x18c   :  { %v2964_v48 = vpop.f32.mrb[8].mxu0  ;;  %3783 = vmatprep.mubr.bf16.mxu0 %v5579_v50  ;;  %v4441_v41 = vadd.f32 %v2738_v27, %v5797_v44  ;;  %v2740_v39 = vpop.f32.mrb[9].mxu1  ;;  %v5366_v50 = vld [vmem:[#allocation5 + $0xb1c] ss:$24 sps:$4 sm:$0xff]  }
 0x18d   :  { %v2966_v58 = vpop.f32.mrb[9].mxu0  ;;  %v4443_v32 = vadd.f32 %v2740_v39, %v5800_v8  ;;  %v2742_v63 = vpop.f32.mrb[10].mxu1  ;;  %3381 = vmatpush1.bf16.msra.mxu1 %v5352_v51  ;;  %v6039_v51 = vld [vmem:[#allocation14_spill] sm:$0xff]  ;;  %v5382_v39 = vld [vmem:[#allocation5 + $0xba8] ss:$24 sps:$4 sm:$0xff]  }
 0x18e   :  { %v2968_v34 = vpop.f32.mrb[10].mxu0  ;;  %3833 = vmatpush1.bf16.msra.mxu0 %v5355_v43  ;;  %v4442_v59 = vadd.f32 %v4441_v41, %v2964_v48  ;;  %v4445_v45 = vadd.f32 %v2742_v63, %v5797_v44  ;;  %v2744_v61 = vpop.f32.mrb[11].mxu1  ;;  %3382 = vmatprep.subr.bf16.mxu1 %v5360_v62 }
 0x18f   :  { %v2970_v1 = vpop.f32.mrb[11].mxu0  ;;  %3834 = vmatprep.subr.bf16.mxu0 %v5363_v37  ;;  %v4444_v46 = vadd.f32 %v4443_v32, %v2966_v58  ;;  %v4447_v56 = vadd.f32 %v2744_v61, %v5800_v8  ;;  %v5385_v58 = vld [vmem:[#allocation5 + $0xbb0] ss:$24 sps:$4 sm:$0xff]  }
 0x190   :  { %3951 = vst [vmem:[#allocation7 + $0xc0] sm:$0xff] %v4442_v59  ;;  %v4446_v0 = vadd.f32 %v4445_v45, %v2968_v34  ;;  %3332 = vmatmul.mubr.bf16.gmra.mrb[52].mxu1 %v6036_v18  ;;  %v5393_v59 = vld [vmem:[#allocation5 + $0xbe4] ss:$24 sps:$4 sm:$0xff]  }
 0x191   :  { %3784 = vmatmul.mubr.bf16.gmra.mrb[52].mxu0 %v6036_v18  ;;  %3952 = vst [vmem:[#allocation7 + $0xc8] sm:$0xff] %v4444_v46  ;;  %v4448_v14 = vadd.f32 %v4447_v56, %v2970_v1  ;;  %3383 = vmatpush1.bf16.msra.mxu1 %v5358_v21  ;;  %v5388_v46 = vld [vmem:[#allocation5 + $0xbd8] ss:$24 sps:$4 sm:$0xff]  }
 0x192   :  { %3835 = vmatpush1.bf16.msra.mxu0 %v5361_v33  ;;  %3957 = vst [vmem:[#allocation7 + $0xf0] sm:$0xff] %v4446_v0  ;;  %3384 = vmatprep.subr.bf16.mxu1 %v5366_v50  ;;  %v5390_v33 = vld [vmem:[#allocation5 + $0xbdc] ss:$24 sps:$4 sm:$0xff]   ;;  %v6040_v50 = vld [vmem:[#allocation15_spill] sm:$0xff] }
 0x193   :  { %3836 = vmatprep.subr.bf16.mxu0 %v5369_v52  ;;  %3958 = vst [vmem:[#allocation7 + $0xf8] sm:$0xff] %v4448_v14  ;;  %v2748_v16 = vpop.f32.mrb[12].mxu1  ;;  %3341 = vmatprep.mubr.bf16.mxu1 %v6037_v10  ;;  %v5391_v56 = vld [vmem:[#allocation5 + $0xbe0] ss:$24 sps:$4 sm:$0xff]   ;;  %v6041_v14 = vld [vmem:[#allocation16_spill] sm:$0xff] }
 0x194   :  { %v2974_v3 = vpop.f32.mrb[12].mxu0  ;;  %3793 = vmatprep.mubr.bf16.mxu0 %v6037_v10  ;;  %v4449_v25 = vadd.f32 %v2748_v16, %v5797_v44  ;;  %v2750_v38 = vpop.f32.mrb[13].mxu1 }
 0x195   :  { %v2976_v60 = vpop.f32.mrb[13].mxu0  ;;  %v4451_v47 = vadd.f32 %v2750_v38, %v5800_v8  ;;  %v2752_v29 = vpop.f32.mrb[14].mxu1  ;;  %3385 = vmatpush1.bf16.msra.mxu1 %v5364_v57 }
 0x196   :  { %v2978_v23 = vpop.f32.mrb[14].mxu0  ;;  %3837 = vmatpush1.bf16.msra.mxu0 %v5367_v7  ;;  %v4450_v55 = vadd.f32 %v4449_v25, %v2974_v3  ;;  %v4453_v40 = vadd.f32 %v2752_v29, %v5797_v44  ;;  %v2754_v19 = vpop.f32.mrb[15].mxu1  ;;  %3386 = vmatprep.subr.bf16.mxu1 %v5372_v2 }
 0x197   :  { %v2980_v30 = vpop.f32.mrb[15].mxu0  ;;  %3838 = vmatprep.subr.bf16.mxu0 %v5375_v13  ;;  %v4452_v35 = vadd.f32 %v4451_v47, %v2976_v60  ;;  %v4455_v53 = vadd.f32 %v2754_v19, %v5800_v8 }
 0x198   :  { %3963 = vst [vmem:[#allocation7 + $0x120] sm:$0xff] %v4450_v55  ;;  %v4454_v49 = vadd.f32 %v4453_v40, %v2978_v23  ;;  %3342 = vmatmul.mubr.bf16.gmra.mrb[56].mxu1 %v6038_v36  ;;  %v6043_v55 = vld [vmem:[#allocation18_spill] sm:$0xff] }
 0x199   :  { %3794 = vmatmul.mubr.bf16.gmra.mrb[56].mxu0 %v6038_v36  ;;  %3964 = vst [vmem:[#allocation7 + $0x128] sm:$0xff] %v4452_v35  ;;  %v4456_v31 = vadd.f32 %v4455_v53, %v2980_v30  ;;  %3387 = vmatpush1.bf16.msra.mxu1 %v5370_v9  ;;  %v6042_v9 = vld [vmem:[#allocation17_spill] sm:$0xff] }
 0x19a   :  { %3839 = vmatpush1.bf16.msra.mxu0 %v5373_v15  ;;  %3969 = vst [vmem:[#allocation7 + $0x150] sm:$0xff] %v4454_v49  ;;  %3388 = vmatprep.subr.bf16.mxu1 %v5378_v42 }
 0x19b   :  { %3840 = vmatprep.subr.bf16.mxu0 %v5381_v20  ;;  %3970 = vst [vmem:[#allocation7 + $0x158] sm:$0xff] %v4456_v31  ;;  %v2758_v6 = vpop.f32.mrb[16].mxu1  ;;  %3351 = vmatprep.mubr.bf16.mxu1 %v6039_v51 }
 0x19c   :  { %v2984_v24 = vpop.f32.mrb[16].mxu0  ;;  %3803 = vmatprep.mubr.bf16.mxu0 %v6039_v51  ;;  %v4457_v43 = vadd.f32 %v2758_v6, %v5797_v44  ;;  %v2760_v62 = vpop.f32.mrb[17].mxu1 }
 0x19d   :  { %v2986_v37 = vpop.f32.mrb[17].mxu0  ;;  %v4459_v27 = vadd.f32 %v2760_v62, %v5800_v8  ;;  %v2762_v48 = vpop.f32.mrb[18].mxu1  ;;  %3389 = vmatpush1.bf16.msra.mxu1 %v5376_v26 }
 0x19e   :  { %v2988_v41 = vpop.f32.mrb[18].mxu0  ;;  %3841 = vmatpush1.bf16.msra.mxu0 %v5379_v17  ;;  %v4458_v32 = vadd.f32 %v4457_v43, %v2984_v24  ;;  %v4461_v63 = vadd.f32 %v2762_v48, %v5797_v44  ;;  %v2764_v34 = vpop.f32.mrb[19].mxu1  ;;  %3390 = vmatprep.subr.bf16.mxu1 %v5384_v5  ;;  %v6044_v24 = vld [vmem:[#allocation19_spill] sm:$0xff]  ;;  %v6045_v43 = vld [vmem:[#allocation20_spill] sm:$0xff] }
 0x19f   :  { %v2990_v21 = vpop.f32.mrb[19].mxu0  ;;  %3842 = vmatprep.subr.bf16.mxu0 %v5387_v4  ;;  %v4460_v45 = vadd.f32 %v4459_v27, %v2986_v37  ;;  %v4463_v61 = vadd.f32 %v2764_v34, %v5800_v8 }
 0x1a0   :  { %3975 = vst [vmem:[#allocation7 + $0x180] sm:$0xff] %v4458_v32  ;;  %v4462_v1 = vadd.f32 %v4461_v63, %v2988_v41  ;;  %3352 = vmatmul.mubr.bf16.gmra.mrb[60].mxu1 %v6040_v50 }
 0x1a1   :  { %3804 = vmatmul.mubr.bf16.gmra.mrb[60].mxu0 %v6040_v50  ;;  %3976 = vst [vmem:[#allocation7 + $0x188] sm:$0xff] %v4460_v45  ;;  %v4464_v52 = vadd.f32 %v4463_v61, %v2990_v21  ;;  %3391 = vmatpush1.bf16.msra.mxu1 %v5382_v39 }
 0x1a2   :  { %3843 = vmatpush1.bf16.msra.mxu0 %v5385_v58  ;;  %3981 = vst [vmem:[#allocation7 + $0x1b0] sm:$0xff] %v4462_v1  ;;  %3392 = vmatprep.subr.bf16.mxu1 %v5390_v33  ;;  %v6046_v1 = vld [vmem:[#allocation21_spill] sm:$0xff] }
 0x1a3   :  { %3844 = vmatprep.subr.bf16.mxu0 %v5393_v59  ;;  %3982 = vst [vmem:[#allocation7 + $0x1b8] sm:$0xff] %v4464_v52  ;;  %v2768_v0 = vpop.f32.mrb[20].mxu1  ;;  %3394 = vmatprep.mubr.bf16.mxu1 %v6041_v14  ;;  %v6047_v52 = vld [vmem:[#allocation22_spill] sm:$0xff] }
 0x1a4   :  { %v2994_v18 = vpop.f32.mrb[20].mxu0  ;;  %3846 = vmatprep.mubr.bf16.mxu0 %v6041_v14  ;;  %v4465_v57 = vadd.f32 %v2768_v0, %v5797_v44  ;;  %v2770_v7 = vpop.f32.mrb[21].mxu1  ;;  %v6052_v0 = vld [vmem:[#allocation27_spill] sm:$0xff]  ;;  %v631_v14 = vsub.s32 2, %v5783_v12 }
 0x1a5   :  { %v2996_v2 = vpop.f32.mrb[21].mxu0  ;;  %v4467_v13 = vadd.f32 %v2770_v7, %v5800_v8  ;;  %v2772_v16 = vpop.f32.mrb[22].mxu1  ;;  %3393 = vmatpush1.bf16.msra.mxu1 %v5388_v46  ;;  %v6049_v46 = vld [vmem:[#allocation24_spill] sm:$0xff]  ;;  %v635_v7 = vsub.s32 3, %v5783_v12 }
 0x1a6   :  { %v2998_v3 = vpop.f32.mrb[22].mxu0  ;;  %3845 = vmatpush1.bf16.msra.mxu0 %v5391_v56  ;;  %v4466_v10 = vadd.f32 %v4465_v57, %v2994_v18  ;;  %v4469_v25 = vadd.f32 %v2772_v16, %v5797_v44  ;;  %v2774_v38 = vpop.f32.mrb[23].mxu1  ;;  %v6051_v56 = vld [vmem:[#allocation26_spill] sm:$0xff]  ;;  %v6053_v18 = vld [vmem:[#allocation28_spill] sm:$0xff]  ;;  %v639_v57 = vsub.s32 4, %v5783_v12 }
 0x1a7   :  { %v3000_v60 = vpop.f32.mrb[23].mxu0  ;;  %v4468_v47 = vadd.f32 %v4467_v13, %v2996_v2  ;;  %v4471_v29 = vadd.f32 %v2774_v38, %v5800_v8  ;;  %v643_v2 = vsub.s32 5, %v5783_v12  ;;  %v5891_v13 = vrot.slane %v5792_v11, %v631_v14 }
 0x1a8   :  { %3987 = vst [vmem:[#allocation7 + $0x1e0] sm:$0xff] %v4466_v10  ;;  %v4470_v23 = vadd.f32 %v4469_v25, %v2998_v3  ;;  %3395 = vmatmul.mubr.bf16.vlgmr.msra.gmra.mrb[32].mxu1 %v6042_v9 }
 0x1a9   :  { %3847 = vmatmul.mubr.bf16.vlgmr.msra.gmra.mrb[32].mxu0 %v6042_v9  ;;  %3988 = vst [vmem:[#allocation7 + $0x1e8] sm:$0xff] %v4468_v47  ;;  %v4472_v15 = vadd.f32 %v4471_v29, %v3000_v60  ;;  %3404 = vmatprep.mubr.bf16.mxu1 %v6043_v55  ;;  %v5900_v16 = vrot.slane %v5792_v11, %v643_v2 }
 0x1aa   :  { %3856 = vmatprep.mubr.bf16.mxu0 %v6043_v55  ;;  %3993 = vst [vmem:[#allocation7 + $0x210] sm:$0xff] %v4470_v23 }
 0x1ab   :  { %3994 = vst [vmem:[#allocation7 + $0x218] sm:$0xff] %v4472_v15  ;;  %v2778_v40 = vpop.f32.mrb[24].mxu1 }
 0x1ac   :  { %v3004_v19 = vpop.f32.mrb[24].mxu0  ;;  %v4473_v30 = vadd.f32 %v2778_v40, %v5797_v44  ;;  %v2780_v42 = vpop.f32.mrb[25].mxu1 }
 0x1ad   :  { %v3006_v20 = vpop.f32.mrb[25].mxu0  ;;  %v4475_v35 = vadd.f32 %v2780_v42, %v5800_v8  ;;  %v2782_v53 = vpop.f32.mrb[26].mxu1 }
 0x1ae   :  { %v3008_v49 = vpop.f32.mrb[26].mxu0  ;;  %v4474_v36 = vadd.f32 %v4473_v30, %v3004_v19  ;;  %v4477_v31 = vadd.f32 %v2782_v53, %v5797_v44  ;;  %v2784_v26 = vpop.f32.mrb[27].mxu1 }
 0x1af   :  { %v3010_v17 = vpop.f32.mrb[27].mxu0  ;;  %v4476_v5 = vadd.f32 %v4475_v35, %v3006_v20  ;;  %v4479_v4 = vadd.f32 %v2784_v26, %v5800_v8 }
 0x1b0   :  { %3999 = vst [vmem:[#allocation7 + $0x240] sm:$0xff] %v4474_v36  ;;  %v4478_v6 = vadd.f32 %v4477_v31, %v3008_v49  ;;  %3405 = vmatmul.mubr.bf16.gmra.mrb[36].mxu1 %v6044_v24 }
 0x1b1   :  { %3857 = vmatmul.mubr.bf16.gmra.mrb[36].mxu0 %v6044_v24  ;;  %4000 = vst [vmem:[#allocation7 + $0x248] sm:$0xff] %v4476_v5  ;;  %v4480_v51 = vadd.f32 %v4479_v4, %v3010_v17  ;;  %3414 = vmatprep.mubr.bf16.mxu1 %v6045_v43 }
 0x1b2   :  { %3866 = vmatprep.mubr.bf16.mxu0 %v6045_v43  ;;  %4005 = vst [vmem:[#allocation7 + $0x270] sm:$0xff] %v4478_v6 }
 0x1b3   :  { %4006 = vst [vmem:[#allocation7 + $0x278] sm:$0xff] %v4480_v51  ;;  %v2788_v62 = vpop.f32.mrb[28].mxu1 }
 0x1b4   :  { %v3014_v37 = vpop.f32.mrb[28].mxu0  ;;  %v4481_v27 = vadd.f32 %v2788_v62, %v5797_v44  ;;  %v2790_v48 = vpop.f32.mrb[29].mxu1 }
 0x1b5   :  { %v3016_v41 = vpop.f32.mrb[29].mxu0  ;;  %v4483_v39 = vadd.f32 %v2790_v48, %v5800_v8  ;;  %v2792_v58 = vpop.f32.mrb[30].mxu1 }
 0x1b6   :  { %v3018_v32 = vpop.f32.mrb[30].mxu0  ;;  %v4482_v63 = vadd.f32 %v4481_v27, %v3014_v37  ;;  %v4485_v34 = vadd.f32 %v2792_v58, %v5797_v44  ;;  %v2794_v21 = vpop.f32.mrb[31].mxu1  ;;  %v6048_v44 = vld [vmem:[#allocation23_spill] sm:$0xff] }
 0x1b7   :  { %v3020_v33 = vpop.f32.mrb[31].mxu0  ;;  %v4484_v59 = vadd.f32 %v4483_v39, %v3016_v41  ;;  %v4487_v45 = vadd.f32 %v2794_v21, %v5800_v8  ;;  %v6050_v8 = vld [vmem:[#allocation25_spill] sm:$0xff] }
 0x1b8   :  { %4011 = vst [vmem:[#allocation7 + $0x2a0] sm:$0xff] %v4482_v63  ;;  %v4486_v61 = vadd.f32 %v4485_v34, %v3018_v32  ;;  %3415 = vmatmul.mubr.bf16.gmra.mrb[40].mxu1 %v6046_v1 }
 0x1b9   :  { %3867 = vmatmul.mubr.bf16.gmra.mrb[40].mxu0 %v6046_v1  ;;  %4012 = vst [vmem:[#allocation7 + $0x2a8] sm:$0xff] %v4484_v59  ;;  %v4488_v50 = vadd.f32 %v4487_v45, %v3020_v33  ;;  %3424 = vmatprep.mubr.bf16.mxu1 %v6047_v52 }
 0x1ba   :  { %3876 = vmatprep.mubr.bf16.mxu0 %v6047_v52  ;;  %4017 = vst [vmem:[#allocation7 + $0x2d0] sm:$0xff] %v4486_v61 }
 0x1bb   :  { %4018 = vst [vmem:[#allocation7 + $0x2d8] sm:$0xff] %v4488_v50 }
 0x1c0   :  { %3425 = vmatmul.mubr.bf16.gmra.mrb[44].mxu1 %v6048_v44 }
 0x1c1   :  { %3877 = vmatmul.mubr.bf16.gmra.mrb[44].mxu0 %v6048_v44  ;;  %3434 = vmatprep.mubr.bf16.mxu1 %v6049_v46 }
 0x1c2   :  { %3886 = vmatprep.mubr.bf16.mxu0 %v6049_v46 }
 0x1c8   :  { %3435 = vmatmul.mubr.bf16.gmra.mrb[48].mxu1 %v6050_v8 }
 0x1c9   :  { %3887 = vmatmul.mubr.bf16.gmra.mrb[48].mxu0 %v6050_v8  ;;  %3444 = vmatprep.mubr.bf16.mxu1 %v6051_v56 }
 0x1ca   :  { %3896 = vmatprep.mubr.bf16.mxu0 %v6051_v56 }
 0x1d0   :  { %3445 = vmatmul.mubr.bf16.gmra.mrb[52].mxu1 %v6052_v0 }
 0x1d1   :  { %3897 = vmatmul.mubr.bf16.gmra.mrb[52].mxu0 %v6052_v0  ;;  %3454 = vmatprep.mubr.bf16.mxu1 %v6053_v18 }
 0x1d2   :  { %3906 = vmatprep.mubr.bf16.mxu0 %v6053_v18 }
 0x1d8   :  { %3455 = vmatmul.mubr.bf16.gmra.mrb[56].mxu1 %v5695_v54 }
 0x1d9   :  { %3907 = vmatmul.mubr.bf16.gmra.mrb[56].mxu0 %v5695_v54  ;;  %3464 = vmatprep.mubr.bf16.mxu1 %v5699_v28  ;;  %v5894_v54 = vrot.slane %v5792_v11, %v639_v57 }
 0x1da   :  { %3916 = vmatprep.mubr.bf16.mxu0 %v5699_v28  ;;  %v5897_v28 = vrot.slane %v5792_v11, %v635_v7 }
 0x1e0   :  { %3465 = vmatmul.mubr.bf16.gmra.mrb[60].mxu1 %v5707_v22 }
 0x1e1   :  { %3917 = vmatmul.mubr.bf16.gmra.mrb[60].mxu0 %v5707_v22 }
 0x27b   :  { %v3396_v22 = vpop.f32.mrb[32].mxu1 }
 0x27c   :  { %v3848_v3 = vpop.f32.mrb[32].mxu0  ;;  %v4489_v10 = vadd.f32 %v3396_v22, %v5891_v13  ;;  %v3398_v38 = vpop.f32.mrb[33].mxu1 }
 0x27d   :  { %v4521_v25 = vadd.f32 %v3848_v3, %v5894_v54  ;;  %v3850_v12 = vpop.f32.mrb[33].mxu0  ;;  %v4490_v60 = vadd.f32 %v3398_v38, %v5897_v28  ;;  %v3400_v29 = vpop.f32.mrb[34].mxu1 }
 0x27e   :  { %v4522_v47 = vadd.f32 %v3850_v12, %v5900_v16  ;;  %v3852_v23 = vpop.f32.mrb[34].mxu0  ;;  %3929 = vst [vmem:[#allocation7 + $0x10] sm:$0xff] %v4489_v10  ;;  %v4491_v9 = vadd.f32 %v3400_v29, %v5891_v13  ;;  %v3402_v15 = vpop.f32.mrb[35].mxu1 }
 0x27f   :  { %3931 = vst [vmem:[#allocation7 + $0x20] sm:$0xff] %v4521_v25  ;;  %v4523_v11 = vadd.f32 %v3852_v23, %v5894_v54  ;;  %v3854_v55 = vpop.f32.mrb[35].mxu0  ;;  %3930 = vst [vmem:[#allocation7 + $0x18] sm:$0xff] %v4490_v60  ;;  %v4492_v40 = vadd.f32 %v3402_v15, %v5897_v28 }
 0x280   :  { %3932 = vst [vmem:[#allocation7 + $0x28] sm:$0xff] %v4522_v47  ;;  %v4524_v19 = vadd.f32 %v3854_v55, %v5900_v16  ;;  %3935 = vst [vmem:[#allocation7 + $0x40] sm:$0xff] %v4491_v9 }
 0x281   :  { %3937 = vst [vmem:[#allocation7 + $0x50] sm:$0xff] %v4523_v11  ;;  %3936 = vst [vmem:[#allocation7 + $0x48] sm:$0xff] %v4492_v40 }
 0x282   :  { %3938 = vst [vmem:[#allocation7 + $0x58] sm:$0xff] %v4524_v19 }
 0x283   :  { %v3406_v30 = vpop.f32.mrb[36].mxu1 }
 0x284   :  { %v3858_v42 = vpop.f32.mrb[36].mxu0  ;;  %v4493_v20 = vadd.f32 %v3406_v30, %v5891_v13  ;;  %v3408_v53 = vpop.f32.mrb[37].mxu1 }
 0x285   :  { %v4525_v35 = vadd.f32 %v3858_v42, %v5894_v54  ;;  %v3860_v49 = vpop.f32.mrb[37].mxu0  ;;  %v4494_v36 = vadd.f32 %v3408_v53, %v5897_v28  ;;  %v3410_v26 = vpop.f32.mrb[38].mxu1 }
 0x286   :  { %v4526_v31 = vadd.f32 %v3860_v49, %v5900_v16  ;;  %v3862_v17 = vpop.f32.mrb[38].mxu0  ;;  %3941 = vst [vmem:[#allocation7 + $0x70] sm:$0xff] %v4493_v20  ;;  %v4495_v5 = vadd.f32 %v3410_v26, %v5891_v13  ;;  %v3412_v6 = vpop.f32.mrb[39].mxu1 }
 0x287   :  { %3943 = vst [vmem:[#allocation7 + $0x80] sm:$0xff] %v4525_v35  ;;  %v4527_v4 = vadd.f32 %v3862_v17, %v5894_v54  ;;  %v3864_v24 = vpop.f32.mrb[39].mxu0  ;;  %3942 = vst [vmem:[#allocation7 + $0x78] sm:$0xff] %v4494_v36  ;;  %v4496_v51 = vadd.f32 %v3412_v6, %v5897_v28 }
 0x288   :  { %3944 = vst [vmem:[#allocation7 + $0x88] sm:$0xff] %v4526_v31  ;;  %v4528_v43 = vadd.f32 %v3864_v24, %v5900_v16  ;;  %3947 = vst [vmem:[#allocation7 + $0xa0] sm:$0xff] %v4495_v5 }
 0x289   :  { %3949 = vst [vmem:[#allocation7 + $0xb0] sm:$0xff] %v4527_v4  ;;  %3948 = vst [vmem:[#allocation7 + $0xa8] sm:$0xff] %v4496_v51 }
 0x28a   :  { %3950 = vst [vmem:[#allocation7 + $0xb8] sm:$0xff] %v4528_v43 }
 0x28b   :  { %v3416_v62 = vpop.f32.mrb[40].mxu1 }
 0x28c   :  { %v3868_v37 = vpop.f32.mrb[40].mxu0  ;;  %v4497_v27 = vadd.f32 %v3416_v62, %v5891_v13  ;;  %v3418_v41 = vpop.f32.mrb[41].mxu1 }
 0x28d   :  { %v4529_v48 = vadd.f32 %v3868_v37, %v5894_v54  ;;  %v3870_v39 = vpop.f32.mrb[41].mxu0  ;;  %v4498_v58 = vadd.f32 %v3418_v41, %v5897_v28  ;;  %v3420_v63 = vpop.f32.mrb[42].mxu1 }
 0x28e   :  { %v4530_v32 = vadd.f32 %v3870_v39, %v5900_v16  ;;  %v3872_v34 = vpop.f32.mrb[42].mxu0  ;;  %3953 = vst [vmem:[#allocation7 + $0xd0] sm:$0xff] %v4497_v27  ;;  %v4499_v21 = vadd.f32 %v3420_v63, %v5891_v13  ;;  %v3422_v59 = vpop.f32.mrb[43].mxu1 }
 0x28f   :  { %3955 = vst [vmem:[#allocation7 + $0xe0] sm:$0xff] %v4529_v48  ;;  %v4531_v33 = vadd.f32 %v3872_v34, %v5894_v54  ;;  %v3874_v45 = vpop.f32.mrb[43].mxu0  ;;  %3954 = vst [vmem:[#allocation7 + $0xd8] sm:$0xff] %v4498_v58  ;;  %v4500_v61 = vadd.f32 %v3422_v59, %v5897_v28 }
 0x290   :  { %3956 = vst [vmem:[#allocation7 + $0xe8] sm:$0xff] %v4530_v32  ;;  %v4532_v1 = vadd.f32 %v3874_v45, %v5900_v16  ;;  %3959 = vst [vmem:[#allocation7 + $0x100] sm:$0xff] %v4499_v21 }
 0x291   :  { %3961 = vst [vmem:[#allocation7 + $0x110] sm:$0xff] %v4531_v33  ;;  %3960 = vst [vmem:[#allocation7 + $0x108] sm:$0xff] %v4500_v61 }
 0x292   :  { %3962 = vst [vmem:[#allocation7 + $0x118] sm:$0xff] %v4532_v1 }
 0x293   :  { %v3426_v50 = vpop.f32.mrb[44].mxu1 }
 0x294   :  { %v3878_v52 = vpop.f32.mrb[44].mxu0  ;;  %v4501_v44 = vadd.f32 %v3426_v50, %v5891_v13  ;;  %v3428_v8 = vpop.f32.mrb[45].mxu1 }
 0x295   :  { %v4533_v46 = vadd.f32 %v3878_v52, %v5894_v54  ;;  %v3880_v56 = vpop.f32.mrb[45].mxu0  ;;  %v4502_v0 = vadd.f32 %v3428_v8, %v5897_v28  ;;  %v3430_v14 = vpop.f32.mrb[46].mxu1 }
 0x296   :  { %v4534_v18 = vadd.f32 %v3880_v56, %v5900_v16  ;;  %v3882_v57 = vpop.f32.mrb[46].mxu0  ;;  %3965 = vst [vmem:[#allocation7 + $0x130] sm:$0xff] %v4501_v44  ;;  %v4503_v7 = vadd.f32 %v3430_v14, %v5891_v13  ;;  %v3432_v22 = vpop.f32.mrb[47].mxu1 }
 0x297   :  { %3967 = vst [vmem:[#allocation7 + $0x140] sm:$0xff] %v4533_v46  ;;  %v4535_v2 = vadd.f32 %v3882_v57, %v5894_v54  ;;  %v3884_v3 = vpop.f32.mrb[47].mxu0  ;;  %3966 = vst [vmem:[#allocation7 + $0x138] sm:$0xff] %v4502_v0  ;;  %v4504_v10 = vadd.f32 %v3432_v22, %v5897_v28 }
 0x298   :  { %3968 = vst [vmem:[#allocation7 + $0x148] sm:$0xff] %v4534_v18  ;;  %v4536_v25 = vadd.f32 %v3884_v3, %v5900_v16  ;;  %3971 = vst [vmem:[#allocation7 + $0x160] sm:$0xff] %v4503_v7 }
 0x299   :  { %3973 = vst [vmem:[#allocation7 + $0x170] sm:$0xff] %v4535_v2  ;;  %3972 = vst [vmem:[#allocation7 + $0x168] sm:$0xff] %v4504_v10 }
 0x29a   :  { %3974 = vst [vmem:[#allocation7 + $0x178] sm:$0xff] %v4536_v25 }
 0x29b   :  { %v3436_v38 = vpop.f32.mrb[48].mxu1 }
 0x29c   :  { %v3888_v12 = vpop.f32.mrb[48].mxu0  ;;  %v4505_v60 = vadd.f32 %v3436_v38, %v5891_v13  ;;  %v3438_v29 = vpop.f32.mrb[49].mxu1 }
 0x29d   :  { %v4537_v47 = vadd.f32 %v3888_v12, %v5894_v54  ;;  %v3890_v23 = vpop.f32.mrb[49].mxu0  ;;  %v4506_v9 = vadd.f32 %v3438_v29, %v5897_v28  ;;  %v3440_v15 = vpop.f32.mrb[50].mxu1 }
 0x29e   :  { %v4538_v11 = vadd.f32 %v3890_v23, %v5900_v16  ;;  %v3892_v55 = vpop.f32.mrb[50].mxu0  ;;  %3977 = vst [vmem:[#allocation7 + $0x190] sm:$0xff] %v4505_v60  ;;  %v4507_v40 = vadd.f32 %v3440_v15, %v5891_v13  ;;  %v3442_v30 = vpop.f32.mrb[51].mxu1 }
 0x29f   :  { %3979 = vst [vmem:[#allocation7 + $0x1a0] sm:$0xff] %v4537_v47  ;;  %v4539_v19 = vadd.f32 %v3892_v55, %v5894_v54  ;;  %v3894_v42 = vpop.f32.mrb[51].mxu0  ;;  %3978 = vst [vmem:[#allocation7 + $0x198] sm:$0xff] %v4506_v9  ;;  %v4508_v20 = vadd.f32 %v3442_v30, %v5897_v28 }
 0x2a0   :  { %3980 = vst [vmem:[#allocation7 + $0x1a8] sm:$0xff] %v4538_v11  ;;  %v4540_v35 = vadd.f32 %v3894_v42, %v5900_v16  ;;  %3983 = vst [vmem:[#allocation7 + $0x1c0] sm:$0xff] %v4507_v40 }
 0x2a1   :  { %3985 = vst [vmem:[#allocation7 + $0x1d0] sm:$0xff] %v4539_v19  ;;  %3984 = vst [vmem:[#allocation7 + $0x1c8] sm:$0xff] %v4508_v20 }
 0x2a2   :  { %3986 = vst [vmem:[#allocation7 + $0x1d8] sm:$0xff] %v4540_v35 }
 0x2a3   :  { %v3446_v53 = vpop.f32.mrb[52].mxu1 }
 0x2a4   :  { %v3898_v49 = vpop.f32.mrb[52].mxu0  ;;  %v4509_v36 = vadd.f32 %v3446_v53, %v5891_v13  ;;  %v3448_v26 = vpop.f32.mrb[53].mxu1 }
 0x2a5   :  { %v4541_v31 = vadd.f32 %v3898_v49, %v5894_v54  ;;  %v3900_v17 = vpop.f32.mrb[53].mxu0  ;;  %v4510_v5 = vadd.f32 %v3448_v26, %v5897_v28  ;;  %v3450_v6 = vpop.f32.mrb[54].mxu1 }
 0x2a6   :  { %v4542_v4 = vadd.f32 %v3900_v17, %v5900_v16  ;;  %v3902_v24 = vpop.f32.mrb[54].mxu0  ;;  %3989 = vst [vmem:[#allocation7 + $0x1f0] sm:$0xff] %v4509_v36  ;;  %v4511_v51 = vadd.f32 %v3450_v6, %v5891_v13  ;;  %v3452_v62 = vpop.f32.mrb[55].mxu1 }
 0x2a7   :  { %3991 = vst [vmem:[#allocation7 + $0x200] sm:$0xff] %v4541_v31  ;;  %v4543_v43 = vadd.f32 %v3902_v24, %v5894_v54  ;;  %v3904_v37 = vpop.f32.mrb[55].mxu0  ;;  %3990 = vst [vmem:[#allocation7 + $0x1f8] sm:$0xff] %v4510_v5  ;;  %v4512_v27 = vadd.f32 %v3452_v62, %v5897_v28 }
 0x2a8   :  { %3992 = vst [vmem:[#allocation7 + $0x208] sm:$0xff] %v4542_v4  ;;  %v4544_v48 = vadd.f32 %v3904_v37, %v5900_v16  ;;  %3995 = vst [vmem:[#allocation7 + $0x220] sm:$0xff] %v4511_v51 }
 0x2a9   :  { %3997 = vst [vmem:[#allocation7 + $0x230] sm:$0xff] %v4543_v43  ;;  %3996 = vst [vmem:[#allocation7 + $0x228] sm:$0xff] %v4512_v27 }
 0x2aa   :  { %3998 = vst [vmem:[#allocation7 + $0x238] sm:$0xff] %v4544_v48 }
 0x2ab   :  { %v3456_v41 = vpop.f32.mrb[56].mxu1 }
 0x2ac   :  { %v3908_v39 = vpop.f32.mrb[56].mxu0  ;;  %v4513_v58 = vadd.f32 %v3456_v41, %v5891_v13  ;;  %v3458_v63 = vpop.f32.mrb[57].mxu1 }
 0x2ad   :  { %v4545_v32 = vadd.f32 %v3908_v39, %v5894_v54  ;;  %v3910_v34 = vpop.f32.mrb[57].mxu0  ;;  %v4514_v21 = vadd.f32 %v3458_v63, %v5897_v28  ;;  %v3460_v59 = vpop.f32.mrb[58].mxu1 }
 0x2ae   :  { %v4546_v33 = vadd.f32 %v3910_v34, %v5900_v16  ;;  %v3912_v45 = vpop.f32.mrb[58].mxu0  ;;  %4001 = vst [vmem:[#allocation7 + $0x250] sm:$0xff] %v4513_v58  ;;  %v4515_v61 = vadd.f32 %v3460_v59, %v5891_v13  ;;  %v3462_v50 = vpop.f32.mrb[59].mxu1 }
 0x2af   :  { %4003 = vst [vmem:[#allocation7 + $0x260] sm:$0xff] %v4545_v32  ;;  %v4547_v1 = vadd.f32 %v3912_v45, %v5894_v54  ;;  %v3914_v52 = vpop.f32.mrb[59].mxu0  ;;  %4002 = vst [vmem:[#allocation7 + $0x258] sm:$0xff] %v4514_v21  ;;  %v4516_v44 = vadd.f32 %v3462_v50, %v5897_v28 }
 0x2b0   :  { %4004 = vst [vmem:[#allocation7 + $0x268] sm:$0xff] %v4546_v33  ;;  %v4548_v46 = vadd.f32 %v3914_v52, %v5900_v16  ;;  %4007 = vst [vmem:[#allocation7 + $0x280] sm:$0xff] %v4515_v61 }
 0x2b1   :  { %4009 = vst [vmem:[#allocation7 + $0x290] sm:$0xff] %v4547_v1  ;;  %4008 = vst [vmem:[#allocation7 + $0x288] sm:$0xff] %v4516_v44 }
 0x2b2   :  { %4010 = vst [vmem:[#allocation7 + $0x298] sm:$0xff] %v4548_v46 }
 0x2b3   :  { %v3466_v8 = vpop.f32.mrb[60].mxu1 }
 0x2b4   :  { %v3918_v56 = vpop.f32.mrb[60].mxu0  ;;  %v4517_v0 = vadd.f32 %v3466_v8, %v5891_v13  ;;  %v3468_v14 = vpop.f32.mrb[61].mxu1 }
 0x2b5   :  { %v4549_v18 = vadd.f32 %v3918_v56, %v5894_v54  ;;  %v3920_v57 = vpop.f32.mrb[61].mxu0  ;;  %v4518_v7 = vadd.f32 %v3468_v14, %v5897_v28  ;;  %v3470_v22 = vpop.f32.mrb[62].mxu1 }
 0x2b6   :  { %v4550_v2 = vadd.f32 %v3920_v57, %v5900_v16  ;;  %v3922_v3 = vpop.f32.mrb[62].mxu0  ;;  %4013 = vst [vmem:[#allocation7 + $0x2b0] sm:$0xff] %v4517_v0  ;;  %v4519_v10 = vadd.f32 %v3470_v22, %v5891_v13  ;;  %v3472_v38 = vpop.f32.mrb[63].mxu1 }
 0x2b7   :  { %4015 = vst [vmem:[#allocation7 + $0x2c0] sm:$0xff] %v4549_v18  ;;  %v4551_v25 = vadd.f32 %v3922_v3, %v5894_v54  ;;  %v3924_v12 = vpop.f32.mrb[63].mxu0  ;;  %4014 = vst [vmem:[#allocation7 + $0x2b8] sm:$0xff] %v4518_v7  ;;  %v4520_v60 = vadd.f32 %v3472_v38, %v5897_v28 }
 0x2b8   :  { %4016 = vst [vmem:[#allocation7 + $0x2c8] sm:$0xff] %v4550_v2  ;;  %v4552_v47 = vadd.f32 %v3924_v12, %v5900_v16  ;;  %4019 = vst [vmem:[#allocation7 + $0x2e0] sm:$0xff] %v4519_v10 }
 0x2b9   :  { %4021 = vst [vmem:[#allocation7 + $0x2f0] sm:$0xff] %v4551_v25  ;;  %4020 = vst [vmem:[#allocation7 + $0x2e8] sm:$0xff] %v4520_v60 }
 0x2ba   :  { %4022 = vst [vmem:[#allocation7 + $0x2f8] sm:$0xff] %v4552_v47 }
 0x2bb   :  { %5449 = shalt.err (!%p5446_p6)
}
 0x2bc   :  { %s5450_s17 = scalar_lea.hbm %s5981_s3, 12288 }
 0x2bd   :  { %p5451_p7 = scmp.ne.s32.totalorder %s5981_s3, %s5450_s17  ;;  %p5454_p8 = scmp.lt.u32.totalorder %s5450_s17, %s5981_s3 }
 0x2bf   :  { %p5456_p9 = pnand %p5454_p8, %p5451_p7 }
 0x2c1   :  { %5459 = shalt.err (!%p5456_p9)
}
 0x2c2   :  { %s5473_s22 = smov 768   ;;  %s5474_s23 = smov 48  }
 0x2c3   :  { %4034 = dma.vmem_to_hbm [thread:$0]  %s4029_s13, 12288, %s5981_s3, [#allocation4], %s5473_s22, %s5473_s22, %s5474_s23  }
 0x2c4   :  { %5464 = dma.done.wait [#allocation4], 12288  }
 0x2c5   :  { %5465 = vsyncadd [#allocation4], 4294955008 }
 0x2c6   :  { %4038 = vsyncpa [#allocation3], 1 }
 0x2c7   :  { %4039 = vsyncpa [#allocation6], 1 }
 0x2c8   :  { %4040 = vsyncpa [#allocation4], 1 }

</bundles_post_ra>
